<compile_context>
chip_gen: v6e
topology: v6e:2x2x1
jax: 0.10.0
libtpu: 0.0.40
codegen_flags: <defaults>
</compile_context>

<pallas_src>
import functools
import math

import jax
import jax.numpy as jnp
from jax.experimental import pallas as pl
from jax.experimental.pallas import tpu as pltpu  # noqa: F401  (TPU backend)

MODEL_SIZE = 32
N_HEADS = 4
D_HEAD = MODEL_SIZE // N_HEADS
INNER_SIZE = 64
LN_EPS = 1e-5
NEG_INF = -1e30

SEQ_LEN = 8
BATCH = 2
R_LEN = 2 * SEQ_LEN - 1   # relative positions T-1 ... -(T-1)


# ----------------------------------------------------------------------------
# Pallas kernel: the full encoder layer, single invocation (no grid)
# ----------------------------------------------------------------------------
def _rel_encoder_layer_kernel(
    T, B, H, n_heads,
    x_ref, rm_ref, bias_ref, rs_ref, hm_ref,
    ln1_g_ref, ln1_b_ref,
    wqkv_ref, bqkv_ref, rwb_ref, rrb_ref,
    wo_ref, bo_ref,
    ln2_g_ref, ln2_b_ref,
    w1_ref, b1_ref, w2_ref, b2_ref,
    out_ref,
):
    f32 = jnp.float32
    d_head = H // n_heads
    BT = B * T
    R = 2 * T - 1
    GR = B * n_heads * R                       # packed lane width of the score slab
    scale = 1.0 / math.sqrt(d_head)

    x = x_ref[...]                             # [BT, H]

    def layer_norm(v, g, b):
        mu = jnp.mean(v, axis=-1, keepdims=True)
        var = jnp.mean((v - mu) * (v - mu), axis=-1, keepdims=True)
        return (v - mu) * jax.lax.rsqrt(var + LN_EPS) * g + b

    # ---- self-attention block: LN -> fused QKV -> packed relative attention ----
    xq = layer_norm(x, ln1_g_ref[...], ln1_b_ref[...])

    qkv = jnp.dot(xq, wqkv_ref[...], preferred_element_type=f32) + bqkv_ref[...]  # [BT, 3H]
    q = qkv[:, 0:H]
    k = qkv[:, H:2 * H]
    v = qkv[:, 2 * H:3 * H]

    rw_q = q + rwb_ref[...]                    # q + r_w_bias (head-packed lanes)
    rr_q = q + rrb_ref[...]                    # q + r_r_bias

    # Build masked key / value matrices, packed over (batch, head, key-slot):
    #   km[(b*nH+h)*R + j, c] = k[b*T + j, c] * (c // dH == h)   (j < T, else 0)
    hm = hm_ref[...]                           # [GR, H]  head-column mask (constant)
    rs = rs_ref[...]                           # [GR, BT] row-selection matrix (constant)
    km = jnp.dot(rs, k, preferred_element_type=f32) * hm          # [GR, H]
    vm = jnp.dot(rs, v, preferred_element_type=f32) * hm          # [GR, H]

    # Content scores (AC) and raw position scores (BD), all heads/batches at once.
    ac = jnp.einsum('ic,gc->ig', rw_q, km, preferred_element_type=f32)         # [BT, GR]
    bd = jnp.einsum('ic,gc->ig', rr_q, rm_ref[...], preferred_element_type=f32)  # [BT, GR]

    # Transformer-XL relative shift, applied once for every (batch, head) block:
    #   bd_shift[row, g*R + j] = bd[row, g*R + j + (T-1) - (row % T)]
    bd_pad = jnp.concatenate([bd, jnp.zeros((BT, T), f32)], axis=1)            # [BT, GR+T]
    row_mod = jax.lax.broadcasted_iota(jnp.int32, (BT, 1), 0) % T
    bd_shift = jnp.zeros((BT, GR), f32)
    for off in range(T):                       # static unroll: T masked uniform lane shifts
        sel = (row_mod == (T - 1 - off)).astype(f32)
        bd_shift = bd_shift + sel * bd_pad[:, off:off + GR]

    # Scores + additive mask bias (pad keys / cross-batch blocks / j>=T slots -> -1e30).
    s = (ac + bd_shift) * scale + bias_ref[...]                                # [BT, GR]
    m = jnp.max(s, axis=-1, keepdims=True)
    pexp = jnp.exp(s - m)                                                      # masked -> exactly 0

    # Per-head softmax denominator, replicated across that head's dH lanes
    # (hm doubles as the block-sum matrix), then the context in one matmul.
    denom = jnp.dot(pexp, hm, preferred_element_type=f32)                      # [BT, H]
    # TODO(synk): a row whose keys are all padded divides by zero here (the reference NaNs too).
    ctx = jnp.dot(pexp, vm, preferred_element_type=f32) / denom                # [BT, H] head-packed

    attn_out = jnp.dot(ctx, wo_ref[...], preferred_element_type=f32) + bo_ref[...]
    x1 = x + attn_out

    # ---- feed-forward block: LN -> relu MLP -> residual (ffn_scale == 1) ----
    xf = layer_norm(x1, ln2_g_ref[...], ln2_b_ref[...])
    hdn = jnp.maximum(
        jnp.dot(xf, w1_ref[...], preferred_element_type=f32) + b1_ref[...], 0.0)
    ffn = jnp.dot(hdn, w2_ref[...], preferred_element_type=f32) + b2_ref[...]

    out_ref[...] = (x1 + ffn).astype(out_ref.dtype)


# ----------------------------------------------------------------------------
# Wrapper: batch-invariant precompute + constant matrices + pallas_call
# ----------------------------------------------------------------------------
def relative_transformer_encoder_layer(x_tbh, pos_rh, attn_mask_1bt, params):
    T, B, H = x_tbh.shape
    nH = N_HEADS
    dH = H // nH
    R = 2 * T - 1
    BT = B * T
    GR = B * nH * R
    f32 = jnp.float32

    x_flat = jnp.transpose(x_tbh, (1, 0, 2)).reshape(BT, H).astype(f32)        # [BT, H]

    # --- batch-invariant precompute (hoisted out of the kernel) ---
    r_proj = pos_rh.astype(f32) @ params['W_pos'].T + params['b_pos']          # [R, H]

    g_rows = jnp.arange(GR)
    b_of_g = g_rows // (nH * R)
    h_of_g = (g_rows % (nH * R)) // R
    j_of_g = g_rows % R
    col_h = jnp.arange(H)

    head_mask = (col_h[None, :] // dH == h_of_g[:, None]).astype(f32)          # [GR, H]
    row_sel = ((jnp.arange(BT)[None, :] == (b_of_g * T + j_of_g)[:, None])
               & (j_of_g < T)[:, None]).astype(f32)                            # [GR, BT]
    rel_mat = r_proj[j_of_g] * head_mask                                       # [GR, H]

    # Additive attention-mask bias: 0 for valid (same batch, j<T, key not padded),
    # -1e30 otherwise.
    pad = attn_mask_1bt.reshape(B, T)
    pad_ext = jnp.concatenate([pad, jnp.ones((B, R - T), dtype=bool)], axis=1)  # [B, R]
    key_invalid = pad_ext[b_of_g, j_of_g]                                      # [GR]
    row_batch = jnp.repeat(jnp.arange(B), T)                                   # [BT]
    valid = (row_batch[:, None] == b_of_g[None, :]) & (~key_invalid)[None, :]
    bias = jnp.where(valid, 0.0, NEG_INF).astype(f32)                          # [BT, GR]

    # Fused QKV projection weights (x-right-multiply layout).
    w_qkv = jnp.concatenate(
        [params['W_q'].T, params['W_k'].T, params['W_v'].T], axis=1)           # [H, 3H]
    b_qkv = jnp.concatenate(
        [params['b_q'], params['b_k'], params['b_v']])[None, :]                # [1, 3H]

    ins = [
        x_flat, rel_mat, bias, row_sel, head_mask,
        params['ln1_g'][None, :], params['ln1_b'][None, :],
        w_qkv, b_qkv,
        params['r_w_bias'].reshape(1, H), params['r_r_bias'].reshape(1, H),
        params['W_out'].T, params['b_out'][None, :],
        params['ln2_g'][None, :], params['ln2_b'][None, :],
        params['W_1'].T, params['b_1'][None, :],
        params['W_2'].T, params['b_2'][None, :],
    ]
    ins = [a.astype(f32) for a in ins]

    kernel = functools.partial(_rel_encoder_layer_kernel, T, B, H, nH)
    out_flat = pl.pallas_call(
        kernel,
        out_shape=jax.ShapeDtypeStruct((BT, H), f32),
    )(*ins)

    return jnp.transpose(out_flat.reshape(B, T, H), (1, 0, 2))                 # [T, B, H]


# ----------------------------------------------------------------------------
# Deterministic synthetic parameters
# ----------------------------------------------------------------------------
def init_params(key):
    H, F = MODEL_SIZE, INNER_SIZE
    s = 0.05
    keys = jax.random.split(key, 9)

    def lin(k, out_f, in_f):
        k1, k2 = jax.random.split(k)
        return (s * jax.random.normal(k1, (out_f, in_f), jnp.float32),
                s * jax.random.normal(k2, (out_f,), jnp.float32))

    W_q, b_q = lin(keys[0], H, H)
    W_k, b_k = lin(keys[1], H, H)
    W_v, b_v = lin(keys[2], H, H)
    W_pos, b_pos = lin(keys[3], H, H)
    W_out, b_out = lin(keys[4], H, H)
    W_1, b_1 = lin(keys[5], F, H)
    W_2, b_2 = lin(keys[6], H, F)
    r_w_bias = s * jax.random.normal(keys[7], (N_HEADS, D_HEAD), jnp.float32)
    r_r_bias = s * jax.random.normal(keys[8], (N_HEADS, D_HEAD), jnp.float32)

    return dict(
        ln1_g=jnp.ones((H,), jnp.float32), ln1_b=jnp.zeros((H,), jnp.float32),
        ln2_g=jnp.ones((H,), jnp.float32), ln2_b=jnp.zeros((H,), jnp.float32),
        W_q=W_q, b_q=b_q, W_k=W_k, b_k=b_k, W_v=W_v, b_v=b_v,
        W_pos=W_pos, b_pos=b_pos, W_out=W_out, b_out=b_out,
        r_w_bias=r_w_bias, r_r_bias=r_r_bias,
        W_1=W_1, b_1=b_1, W_2=W_2, b_2=b_2,
    )


# ----------------------------------------------------------------------------
# Pure-JAX reference (mirrors the PyTorch eval-mode forward)
# ----------------------------------------------------------------------------
def reference_layer(x, pos, attn_mask, p):
    T, B, H = x.shape
    pad = attn_mask[0]                                    # [B, T] bool

    def ln(v, g, b):
        mu = v.mean(-1, keepdims=True)
        var = ((v - mu) ** 2).mean(-1, keepdims=True)
        return (v - mu) / jnp.sqrt(var + LN_EPS) * g + b

    xq = ln(x, p['ln1_g'], p['ln1_b'])
    q = xq @ p['W_q'].T + p['b_q']
    k = xq @ p['W_k'].T + p['b_k']
    v = xq @ p['W_v'].T + p['b_v']
    r = pos @ p['W_pos'].T + p['b_pos']

    qh = q.reshape(T, B, N_HEADS, D_HEAD)
    kh = k.reshape(T, B, N_HEADS, D_HEAD)
    vh = v.reshape(T, B, N_HEADS, D_HEAD)
    rh = r.reshape(-1, N_HEADS, D_HEAD)

    rwq = qh + p['r_w_bias'][None, None]
    rrq = qh + p['r_r_bias'][None, None]

    ac = jnp.einsum('ibhd,jbhd->bhij', rwq, kh)
    bd_raw = jnp.einsum('ibhd,khd->bhik', rrq, rh)
    idx = jnp.arange(T)[None, :] + (T - 1) - jnp.arange(T)[:, None]
    idx = jnp.broadcast_to(idx, (B, N_HEADS, T, T))
    bd = jnp.take_along_axis(bd_raw, idx, axis=-1)        # Transformer-XL rel_shift

    score = (ac + bd) * (D_HEAD ** -0.5)
    score = jnp.where(pad[:, None, None, :], NEG_INF, score)
    attn = jax.nn.softmax(score, axis=-1)
    ctx = jnp.einsum('bhij,jbhd->ibhd', attn, vh).reshape(T, B, H)
    x1 = x + ctx @ p['W_out'].T + p['b_out']

    xf = ln(x1, p['ln2_g'], p['ln2_b'])
    ffn = jax.nn.relu(xf @ p['W_1'].T + p['b_1']) @ p['W_2'].T + p['b_2']
    return x1 + ffn


# ----------------------------------------------------------------------------
if __name__ == "__main__":
    key = jax.random.PRNGKey(0)
    kx, kp = jax.random.split(key)

    params = init_params(kp)
    x = jax.random.normal(kx, (SEQ_LEN, BATCH, MODEL_SIZE), jnp.float32)

    # sinusoidal relative positional embeddings for positions T-1 ... -(T-1)
    pos_seq = jnp.arange(SEQ_LEN - 1, -SEQ_LEN, -1, dtype=jnp.float32)    # [2T-1]
    inv_freq = 1.0 / (10000.0 ** (jnp.arange(0, MODEL_SIZE, 2, dtype=jnp.float32) / MODEL_SIZE))
    sinusoid = pos_seq[:, None] * inv_freq[None, :]
    pos_emb = jnp.concatenate([jnp.sin(sinusoid), jnp.cos(sinusoid)], axis=-1)  # [2T-1, H]

    # padding mask: batch 0 unpadded, batch 1 has its last 2 positions padded
    pad = jnp.zeros((BATCH, SEQ_LEN), dtype=bool).at[1, -2:].set(True)
    attn_mask = pad[None]                                                   # [1, B, T]

    out = relative_transformer_encoder_layer(x, pos_emb, attn_mask, params)
    out = jax.block_until_ready(out)

    ref = reference_layer(x, pos_emb, attn_mask, params)
    assert out.shape == (SEQ_LEN, BATCH, MODEL_SIZE)
    max_err = float(jnp.max(jnp.abs(out - ref)))
    if max_err > 1e-3:
        raise AssertionError(f"Pallas kernel mismatch vs reference: {max_err}")

    print("KERNEL_OK")
</pallas_src>

<mosaic_0001>
module attributes {stable_mosaic.version = 11 : i64} {
  func.func @_rel_encoder_layer_kernel(%arg0: memref<16x32xf32, #tpu.memory_space<vmem>>, %arg1: memref<120x32xf32, #tpu.memory_space<vmem>>, %arg2: memref<16x120xf32, #tpu.memory_space<vmem>>, %arg3: memref<120x16xf32, #tpu.memory_space<vmem>>, %arg4: memref<120x32xf32, #tpu.memory_space<vmem>>, %arg5: memref<1x32xf32, #tpu.memory_space<vmem>>, %arg6: memref<1x32xf32, #tpu.memory_space<vmem>>, %arg7: memref<32x96xf32, #tpu.memory_space<vmem>>, %arg8: memref<1x96xf32, #tpu.memory_space<vmem>>, %arg9: memref<1x32xf32, #tpu.memory_space<vmem>>, %arg10: memref<1x32xf32, #tpu.memory_space<vmem>>, %arg11: memref<32x32xf32, #tpu.memory_space<vmem>>, %arg12: memref<1x32xf32, #tpu.memory_space<vmem>>, %arg13: memref<1x32xf32, #tpu.memory_space<vmem>>, %arg14: memref<1x32xf32, #tpu.memory_space<vmem>>, %arg15: memref<32x64xf32, #tpu.memory_space<vmem>>, %arg16: memref<1x64xf32, #tpu.memory_space<vmem>>, %arg17: memref<64x32xf32, #tpu.memory_space<vmem>>, %arg18: memref<1x32xf32, #tpu.memory_space<vmem>>, %arg19: memref<16x32xf32, #tpu.memory_space<vmem>>) attributes {dimension_semantics = [], scalar_prefetch = 0 : i64, scratch_operands = 0 : i64, tpu.core_type = #tpu.core_type<tc>} {
    %c0 = arith.constant 0 : index
    %c0_0 = arith.constant 0 : index
    %0 = vector.load %arg0[%c0, %c0_0] : memref<16x32xf32, #tpu.memory_space<vmem>>, vector<16x32xf32>
    %c0_1 = arith.constant 0 : index
    %c0_2 = arith.constant 0 : index
    %1 = vector.load %arg5[%c0_1, %c0_2] : memref<1x32xf32, #tpu.memory_space<vmem>>, vector<1x32xf32>
    %c0_3 = arith.constant 0 : index
    %c0_4 = arith.constant 0 : index
    %2 = vector.load %arg6[%c0_3, %c0_4] : memref<1x32xf32, #tpu.memory_space<vmem>>, vector<1x32xf32>
    %cst = arith.constant dense<0.000000e+00> : vector<16xf32>
    %3 = vector.multi_reduction <add>, %0, %cst [1] : vector<16x32xf32> to vector<16xf32>
    %4 = vector.shape_cast %3 : vector<16xf32> to vector<16x1xf32>
    %cst_5 = arith.constant 3.200000e+01 : f32
    %5 = vector.broadcast %cst_5 : f32 to vector<16x1xf32>
    %6 = arith.divf %4, %5 : vector<16x1xf32>
    %7 = vector.broadcast %6 : vector<16x1xf32> to vector<16x32xf32>
    %8 = arith.subf %0, %7 : vector<16x32xf32>
    %9 = vector.broadcast %6 : vector<16x1xf32> to vector<16x32xf32>
    %10 = arith.subf %0, %9 : vector<16x32xf32>
    %11 = arith.mulf %8, %10 : vector<16x32xf32>
    %cst_6 = arith.constant dense<0.000000e+00> : vector<16xf32>
    %12 = vector.multi_reduction <add>, %11, %cst_6 [1] : vector<16x32xf32> to vector<16xf32>
    %13 = vector.shape_cast %12 : vector<16xf32> to vector<16x1xf32>
    %cst_7 = arith.constant 3.200000e+01 : f32
    %14 = vector.broadcast %cst_7 : f32 to vector<16x1xf32>
    %15 = arith.divf %13, %14 : vector<16x1xf32>
    %16 = vector.broadcast %6 : vector<16x1xf32> to vector<16x32xf32>
    %17 = arith.subf %0, %16 : vector<16x32xf32>
    %cst_8 = arith.constant 9.99999974E-6 : f32
    %18 = vector.broadcast %cst_8 : f32 to vector<16x1xf32>
    %19 = arith.addf %15, %18 : vector<16x1xf32>
    %20 = math.rsqrt %19 : vector<16x1xf32>
    %21 = vector.broadcast %20 : vector<16x1xf32> to vector<16x32xf32>
    %22 = arith.mulf %17, %21 : vector<16x32xf32>
    %23 = vector.broadcast %1 : vector<1x32xf32> to vector<16x32xf32>
    %24 = arith.mulf %22, %23 : vector<16x32xf32>
    %25 = vector.broadcast %2 : vector<1x32xf32> to vector<16x32xf32>
    %26 = arith.addf %24, %25 : vector<16x32xf32>
    %c0_9 = arith.constant 0 : index
    %c0_10 = arith.constant 0 : index
    %27 = vector.load %arg7[%c0_9, %c0_10] : memref<32x96xf32, #tpu.memory_space<vmem>>, vector<32x96xf32>
    %cst_11 = arith.constant dense<0.000000e+00> : vector<16x96xf32>
    %28 = tpu.matmul %26, %27, %cst_11 {dimension_numbers = #tpu.dot_dimension_numbers<[1], [0], [0], [1], [0, 0, 1, 1], [], []>} : vector<16x32xf32>, vector<32x96xf32>, vector<16x96xf32> -> vector<16x96xf32>
    %c0_12 = arith.constant 0 : index
    %c0_13 = arith.constant 0 : index
    %29 = vector.load %arg8[%c0_12, %c0_13] : memref<1x96xf32, #tpu.memory_space<vmem>>, vector<1x96xf32>
    %30 = vector.broadcast %29 : vector<1x96xf32> to vector<16x96xf32>
    %31 = arith.addf %28, %30 : vector<16x96xf32>
    %32 = vector.extract_strided_slice %31 {offsets = [0, 0], sizes = [16, 32], strides = [1, 1]} : vector<16x96xf32> to vector<16x32xf32>
    %33 = vector.extract_strided_slice %31 {offsets = [0, 32], sizes = [16, 32], strides = [1, 1]} : vector<16x96xf32> to vector<16x32xf32>
    %34 = vector.extract_strided_slice %31 {offsets = [0, 64], sizes = [16, 32], strides = [1, 1]} : vector<16x96xf32> to vector<16x32xf32>
    %c0_14 = arith.constant 0 : index
    %c0_15 = arith.constant 0 : index
    %35 = vector.load %arg9[%c0_14, %c0_15] : memref<1x32xf32, #tpu.memory_space<vmem>>, vector<1x32xf32>
    %36 = vector.broadcast %35 : vector<1x32xf32> to vector<16x32xf32>
    %37 = arith.addf %32, %36 : vector<16x32xf32>
    %c0_16 = arith.constant 0 : index
    %c0_17 = arith.constant 0 : index
    %38 = vector.load %arg10[%c0_16, %c0_17] : memref<1x32xf32, #tpu.memory_space<vmem>>, vector<1x32xf32>
    %39 = vector.broadcast %38 : vector<1x32xf32> to vector<16x32xf32>
    %40 = arith.addf %32, %39 : vector<16x32xf32>
    %c0_18 = arith.constant 0 : index
    %c0_19 = arith.constant 0 : index
    %41 = vector.load %arg4[%c0_18, %c0_19] : memref<120x32xf32, #tpu.memory_space<vmem>>, vector<120x32xf32>
    %c0_20 = arith.constant 0 : index
    %c0_21 = arith.constant 0 : index
    %42 = vector.load %arg3[%c0_20, %c0_21] : memref<120x16xf32, #tpu.memory_space<vmem>>, vector<120x16xf32>
    %cst_22 = arith.constant dense<0.000000e+00> : vector<120x32xf32>
    %43 = tpu.matmul %42, %33, %cst_22 {dimension_numbers = #tpu.dot_dimension_numbers<[1], [0], [0], [1], [0, 0, 1, 1], [], []>} : vector<120x16xf32>, vector<16x32xf32>, vector<120x32xf32> -> vector<120x32xf32>
    %44 = arith.mulf %43, %41 : vector<120x32xf32>
    %cst_23 = arith.constant dense<0.000000e+00> : vector<120x32xf32>
    %45 = tpu.matmul %42, %34, %cst_23 {dimension_numbers = #tpu.dot_dimension_numbers<[1], [0], [0], [1], [0, 0, 1, 1], [], []>} : vector<120x16xf32>, vector<16x32xf32>, vector<120x32xf32> -> vector<120x32xf32>
    %46 = arith.mulf %45, %41 : vector<120x32xf32>
    "tpu.trace_start"() <{level = 10 : i32, message = "ic,gc->ig"}> : () -> ()
    %cst_24 = arith.constant dense<0.000000e+00> : vector<16x120xf32>
    %47 = tpu.matmul %37, %44, %cst_24 {dimension_numbers = #tpu.dot_dimension_numbers<[1], [1], [0], [0], [0, 0, 1, 0], [], []>} : vector<16x32xf32>, vector<120x32xf32>, vector<16x120xf32> -> vector<16x120xf32>
    "tpu.trace_stop"() : () -> ()
    %c0_25 = arith.constant 0 : index
    %c0_26 = arith.constant 0 : index
    %48 = vector.load %arg1[%c0_25, %c0_26] : memref<120x32xf32, #tpu.memory_space<vmem>>, vector<120x32xf32>
    "tpu.trace_start"() <{level = 10 : i32, message = "ic,gc->ig"}> : () -> ()
    %cst_27 = arith.constant dense<0.000000e+00> : vector<16x120xf32>
    %49 = tpu.matmul %40, %48, %cst_27 {dimension_numbers = #tpu.dot_dimension_numbers<[1], [1], [0], [0], [0, 0, 1, 0], [], []>} : vector<16x32xf32>, vector<120x32xf32>, vector<16x120xf32> -> vector<16x120xf32>
    %cst_28 = arith.constant 0.000000e+00 : f32
    "tpu.trace_stop"() : () -> ()
    %50 = vector.broadcast %cst_28 : f32 to vector<16x8xf32>
    %51 = tpu.concatenate %49, %50 in 1 : vector<16x120xf32>, vector<16x8xf32> -> vector<16x128xf32>
    %52 = tpu.iota {dimensions = array<i32: 0>} : vector<16x1xi32>
    %c8_i32 = arith.constant 8 : i32
    %c0_i32 = arith.constant 0 : i32
    %53 = arith.cmpi eq, %c8_i32, %c0_i32 : i32
    %c1_i32 = arith.constant 1 : i32
    %54 = arith.select %53, %c1_i32, %c8_i32 : i32
    %55 = vector.broadcast %54 : i32 to vector<16x1xi32>
    %56 = arith.remsi %52, %55 : vector<16x1xi32>
    %c0_i32_29 = arith.constant 0 : i32
    %57 = vector.broadcast %c0_i32_29 : i32 to vector<16x1xi32>
    %58 = arith.cmpi ne, %56, %57 : vector<16x1xi32>
    %c0_i32_30 = arith.constant 0 : i32
    %59 = vector.broadcast %c0_i32_30 : i32 to vector<16x1xi32>
    %60 = arith.cmpi slt, %56, %59 : vector<16x1xi32>
    %c0_i32_31 = arith.constant 0 : i32
    %61 = arith.cmpi slt, %54, %c0_i32_31 : i32
    %62 = vector.broadcast %61 : i1 to vector<16x1xi1>
    %63 = vector.broadcast %62 : vector<16x1xi1> to vector<16x1xi1>
    %64 = arith.xori %60, %63 : vector<16x1xi1>
    %65 = arith.andi %64, %58 : vector<16x1xi1>
    %66 = vector.broadcast %54 : i32 to vector<16x1xi32>
    %67 = arith.addi %56, %66 : vector<16x1xi32>
    %68 = arith.select %65, %67, %56 : vector<16x1xi1>, vector<16x1xi32>
    %cst_32 = arith.constant 0.000000e+00 : f32
    %69 = vector.broadcast %cst_32 : f32 to vector<16x120xf32>
    %c7_i32 = arith.constant 7 : i32
    %70 = vector.broadcast %c7_i32 : i32 to vector<16x1xi32>
    %71 = arith.cmpi eq, %68, %70 : vector<16x1xi32>
    %72 = arith.extui %71 : vector<16x1xi1> to vector<16x1xi32>
    %73 = arith.sitofp %72 : vector<16x1xi32> to vector<16x1xf32>
    %74 = vector.extract_strided_slice %51 {offsets = [0, 0], sizes = [16, 120], strides = [1, 1]} : vector<16x128xf32> to vector<16x120xf32>
    %75 = vector.broadcast %73 : vector<16x1xf32> to vector<16x120xf32>
    %76 = arith.mulf %75, %74 : vector<16x120xf32>
    %77 = arith.addf %69, %76 : vector<16x120xf32>
    %c6_i32 = arith.constant 6 : i32
    %78 = vector.broadcast %c6_i32 : i32 to vector<16x1xi32>
    %79 = arith.cmpi eq, %68, %78 : vector<16x1xi32>
    %80 = arith.extui %79 : vector<16x1xi1> to vector<16x1xi32>
    %81 = arith.sitofp %80 : vector<16x1xi32> to vector<16x1xf32>
    %82 = vector.extract_strided_slice %51 {offsets = [0, 1], sizes = [16, 120], strides = [1, 1]} : vector<16x128xf32> to vector<16x120xf32>
    %83 = vector.broadcast %81 : vector<16x1xf32> to vector<16x120xf32>
    %84 = arith.mulf %83, %82 : vector<16x120xf32>
    %85 = arith.addf %77, %84 : vector<16x120xf32>
    %c5_i32 = arith.constant 5 : i32
    %86 = vector.broadcast %c5_i32 : i32 to vector<16x1xi32>
    %87 = arith.cmpi eq, %68, %86 : vector<16x1xi32>
    %88 = arith.extui %87 : vector<16x1xi1> to vector<16x1xi32>
    %89 = arith.sitofp %88 : vector<16x1xi32> to vector<16x1xf32>
    %90 = vector.extract_strided_slice %51 {offsets = [0, 2], sizes = [16, 120], strides = [1, 1]} : vector<16x128xf32> to vector<16x120xf32>
    %91 = vector.broadcast %89 : vector<16x1xf32> to vector<16x120xf32>
    %92 = arith.mulf %91, %90 : vector<16x120xf32>
    %93 = arith.addf %85, %92 : vector<16x120xf32>
    %c4_i32 = arith.constant 4 : i32
    %94 = vector.broadcast %c4_i32 : i32 to vector<16x1xi32>
    %95 = arith.cmpi eq, %68, %94 : vector<16x1xi32>
    %96 = arith.extui %95 : vector<16x1xi1> to vector<16x1xi32>
    %97 = arith.sitofp %96 : vector<16x1xi32> to vector<16x1xf32>
    %98 = vector.extract_strided_slice %51 {offsets = [0, 3], sizes = [16, 120], strides = [1, 1]} : vector<16x128xf32> to vector<16x120xf32>
    %99 = vector.broadcast %97 : vector<16x1xf32> to vector<16x120xf32>
    %100 = arith.mulf %99, %98 : vector<16x120xf32>
    %101 = arith.addf %93, %100 : vector<16x120xf32>
    %c3_i32 = arith.constant 3 : i32
    %102 = vector.broadcast %c3_i32 : i32 to vector<16x1xi32>
    %103 = arith.cmpi eq, %68, %102 : vector<16x1xi32>
    %104 = arith.extui %103 : vector<16x1xi1> to vector<16x1xi32>
    %105 = arith.sitofp %104 : vector<16x1xi32> to vector<16x1xf32>
    %106 = vector.extract_strided_slice %51 {offsets = [0, 4], sizes = [16, 120], strides = [1, 1]} : vector<16x128xf32> to vector<16x120xf32>
    %107 = vector.broadcast %105 : vector<16x1xf32> to vector<16x120xf32>
    %108 = arith.mulf %107, %106 : vector<16x120xf32>
    %109 = arith.addf %101, %108 : vector<16x120xf32>
    %c2_i32 = arith.constant 2 : i32
    %110 = vector.broadcast %c2_i32 : i32 to vector<16x1xi32>
    %111 = arith.cmpi eq, %68, %110 : vector<16x1xi32>
    %112 = arith.extui %111 : vector<16x1xi1> to vector<16x1xi32>
    %113 = arith.sitofp %112 : vector<16x1xi32> to vector<16x1xf32>
    %114 = vector.extract_strided_slice %51 {offsets = [0, 5], sizes = [16, 120], strides = [1, 1]} : vector<16x128xf32> to vector<16x120xf32>
    %115 = vector.broadcast %113 : vector<16x1xf32> to vector<16x120xf32>
    %116 = arith.mulf %115, %114 : vector<16x120xf32>
    %117 = arith.addf %109, %116 : vector<16x120xf32>
    %c1_i32_33 = arith.constant 1 : i32
    %118 = vector.broadcast %c1_i32_33 : i32 to vector<16x1xi32>
    %119 = arith.cmpi eq, %68, %118 : vector<16x1xi32>
    %120 = arith.extui %119 : vector<16x1xi1> to vector<16x1xi32>
    %121 = arith.sitofp %120 : vector<16x1xi32> to vector<16x1xf32>
    %122 = vector.extract_strided_slice %51 {offsets = [0, 6], sizes = [16, 120], strides = [1, 1]} : vector<16x128xf32> to vector<16x120xf32>
    %123 = vector.broadcast %121 : vector<16x1xf32> to vector<16x120xf32>
    %124 = arith.mulf %123, %122 : vector<16x120xf32>
    %125 = arith.addf %117, %124 : vector<16x120xf32>
    %c0_i32_34 = arith.constant 0 : i32
    %126 = vector.broadcast %c0_i32_34 : i32 to vector<16x1xi32>
    %127 = arith.cmpi eq, %68, %126 : vector<16x1xi32>
    %128 = arith.extui %127 : vector<16x1xi1> to vector<16x1xi32>
    %129 = arith.sitofp %128 : vector<16x1xi32> to vector<16x1xf32>
    %130 = vector.extract_strided_slice %51 {offsets = [0, 7], sizes = [16, 120], strides = [1, 1]} : vector<16x128xf32> to vector<16x120xf32>
    %131 = vector.broadcast %129 : vector<16x1xf32> to vector<16x120xf32>
    %132 = arith.mulf %131, %130 : vector<16x120xf32>
    %133 = arith.addf %125, %132 : vector<16x120xf32>
    %134 = arith.addf %47, %133 : vector<16x120xf32>
    %cst_35 = arith.constant 0.353553385 : f32
    %135 = vector.broadcast %cst_35 : f32 to vector<16x120xf32>
    %136 = arith.mulf %134, %135 : vector<16x120xf32>
    %c0_36 = arith.constant 0 : index
    %c0_37 = arith.constant 0 : index
    %137 = vector.load %arg2[%c0_36, %c0_37] : memref<16x120xf32, #tpu.memory_space<vmem>>, vector<16x120xf32>
    %138 = arith.addf %136, %137 : vector<16x120xf32>
    %cst_38 = arith.constant dense<0xFF800000> : vector<16xf32>
    %139 = vector.multi_reduction <maximumf>, %138, %cst_38 [1] : vector<16x120xf32> to vector<16xf32>
    %140 = vector.shape_cast %139 : vector<16xf32> to vector<16x1xf32>
    %141 = vector.broadcast %140 : vector<16x1xf32> to vector<16x120xf32>
    %142 = arith.subf %138, %141 : vector<16x120xf32>
    %143 = math.exp %142 : vector<16x120xf32>
    %cst_39 = arith.constant dense<0.000000e+00> : vector<16x32xf32>
    %144 = tpu.matmul %143, %41, %cst_39 {dimension_numbers = #tpu.dot_dimension_numbers<[1], [0], [0], [1], [0, 0, 1, 1], [], []>} : vector<16x120xf32>, vector<120x32xf32>, vector<16x32xf32> -> vector<16x32xf32>
    %cst_40 = arith.constant dense<0.000000e+00> : vector<16x32xf32>
    %145 = tpu.matmul %143, %46, %cst_40 {dimension_numbers = #tpu.dot_dimension_numbers<[1], [0], [0], [1], [0, 0, 1, 1], [], []>} : vector<16x120xf32>, vector<120x32xf32>, vector<16x32xf32> -> vector<16x32xf32>
    %146 = arith.divf %145, %144 : vector<16x32xf32>
    %c0_41 = arith.constant 0 : index
    %c0_42 = arith.constant 0 : index
    %147 = vector.load %arg11[%c0_41, %c0_42] : memref<32x32xf32, #tpu.memory_space<vmem>>, vector<32x32xf32>
    %cst_43 = arith.constant dense<0.000000e+00> : vector<16x32xf32>
    %148 = tpu.matmul %146, %147, %cst_43 {dimension_numbers = #tpu.dot_dimension_numbers<[1], [0], [0], [1], [0, 0, 1, 1], [], []>} : vector<16x32xf32>, vector<32x32xf32>, vector<16x32xf32> -> vector<16x32xf32>
    %c0_44 = arith.constant 0 : index
    %c0_45 = arith.constant 0 : index
    %149 = vector.load %arg12[%c0_44, %c0_45] : memref<1x32xf32, #tpu.memory_space<vmem>>, vector<1x32xf32>
    %150 = vector.broadcast %149 : vector<1x32xf32> to vector<16x32xf32>
    %151 = arith.addf %148, %150 : vector<16x32xf32>
    %152 = arith.addf %0, %151 : vector<16x32xf32>
    %c0_46 = arith.constant 0 : index
    %c0_47 = arith.constant 0 : index
    %153 = vector.load %arg13[%c0_46, %c0_47] : memref<1x32xf32, #tpu.memory_space<vmem>>, vector<1x32xf32>
    %c0_48 = arith.constant 0 : index
    %c0_49 = arith.constant 0 : index
    %154 = vector.load %arg14[%c0_48, %c0_49] : memref<1x32xf32, #tpu.memory_space<vmem>>, vector<1x32xf32>
    %cst_50 = arith.constant dense<0.000000e+00> : vector<16xf32>
    %155 = vector.multi_reduction <add>, %152, %cst_50 [1] : vector<16x32xf32> to vector<16xf32>
    %156 = vector.shape_cast %155 : vector<16xf32> to vector<16x1xf32>
    %cst_51 = arith.constant 3.200000e+01 : f32
    %157 = vector.broadcast %cst_51 : f32 to vector<16x1xf32>
    %158 = arith.divf %156, %157 : vector<16x1xf32>
    %159 = vector.broadcast %158 : vector<16x1xf32> to vector<16x32xf32>
    %160 = arith.subf %152, %159 : vector<16x32xf32>
    %161 = vector.broadcast %158 : vector<16x1xf32> to vector<16x32xf32>
    %162 = arith.subf %152, %161 : vector<16x32xf32>
    %163 = arith.mulf %160, %162 : vector<16x32xf32>
    %cst_52 = arith.constant dense<0.000000e+00> : vector<16xf32>
    %164 = vector.multi_reduction <add>, %163, %cst_52 [1] : vector<16x32xf32> to vector<16xf32>
    %165 = vector.shape_cast %164 : vector<16xf32> to vector<16x1xf32>
    %cst_53 = arith.constant 3.200000e+01 : f32
    %166 = vector.broadcast %cst_53 : f32 to vector<16x1xf32>
    %167 = arith.divf %165, %166 : vector<16x1xf32>
    %168 = vector.broadcast %158 : vector<16x1xf32> to vector<16x32xf32>
    %169 = arith.subf %152, %168 : vector<16x32xf32>
    %cst_54 = arith.constant 9.99999974E-6 : f32
    %170 = vector.broadcast %cst_54 : f32 to vector<16x1xf32>
    %171 = arith.addf %167, %170 : vector<16x1xf32>
    %172 = math.rsqrt %171 : vector<16x1xf32>
    %173 = vector.broadcast %172 : vector<16x1xf32> to vector<16x32xf32>
    %174 = arith.mulf %169, %173 : vector<16x32xf32>
    %175 = vector.broadcast %153 : vector<1x32xf32> to vector<16x32xf32>
    %176 = arith.mulf %174, %175 : vector<16x32xf32>
    %177 = vector.broadcast %154 : vector<1x32xf32> to vector<16x32xf32>
    %178 = arith.addf %176, %177 : vector<16x32xf32>
    %c0_55 = arith.constant 0 : index
    %c0_56 = arith.constant 0 : index
    %179 = vector.load %arg15[%c0_55, %c0_56] : memref<32x64xf32, #tpu.memory_space<vmem>>, vector<32x64xf32>
    %cst_57 = arith.constant dense<0.000000e+00> : vector<16x64xf32>
    %180 = tpu.matmul %178, %179, %cst_57 {dimension_numbers = #tpu.dot_dimension_numbers<[1], [0], [0], [1], [0, 0, 1, 1], [], []>} : vector<16x32xf32>, vector<32x64xf32>, vector<16x64xf32> -> vector<16x64xf32>
    %c0_58 = arith.constant 0 : index
    %c0_59 = arith.constant 0 : index
    %181 = vector.load %arg16[%c0_58, %c0_59] : memref<1x64xf32, #tpu.memory_space<vmem>>, vector<1x64xf32>
    %182 = vector.broadcast %181 : vector<1x64xf32> to vector<16x64xf32>
    %183 = arith.addf %180, %182 : vector<16x64xf32>
    %cst_60 = arith.constant 0.000000e+00 : f32
    %184 = vector.broadcast %cst_60 : f32 to vector<16x64xf32>
    %185 = arith.maximumf %183, %184 : vector<16x64xf32>
    %c0_61 = arith.constant 0 : index
    %c0_62 = arith.constant 0 : index
    %186 = vector.load %arg17[%c0_61, %c0_62] : memref<64x32xf32, #tpu.memory_space<vmem>>, vector<64x32xf32>
    %cst_63 = arith.constant dense<0.000000e+00> : vector<16x32xf32>
    %187 = tpu.matmul %185, %186, %cst_63 {dimension_numbers = #tpu.dot_dimension_numbers<[1], [0], [0], [1], [0, 0, 1, 1], [], []>} : vector<16x64xf32>, vector<64x32xf32>, vector<16x32xf32> -> vector<16x32xf32>
    %c0_64 = arith.constant 0 : index
    %c0_65 = arith.constant 0 : index
    %188 = vector.load %arg18[%c0_64, %c0_65] : memref<1x32xf32, #tpu.memory_space<vmem>>, vector<1x32xf32>
    %189 = vector.broadcast %188 : vector<1x32xf32> to vector<16x32xf32>
    %190 = arith.addf %187, %189 : vector<16x32xf32>
    %191 = arith.addf %152, %190 : vector<16x32xf32>
    %c0_66 = arith.constant 0 : index
    %c0_67 = arith.constant 0 : index
    %192 = vector.load %arg19[%c0_66, %c0_67] : memref<16x32xf32, #tpu.memory_space<vmem>>, vector<16x32xf32>
    tpu.vector_store %arg19[%c0_66, %c0_67], %191 {strides = array<i32>} : memref<16x32xf32, #tpu.memory_space<vmem>>, vector<16x32xf32>,
    return
  }
}

</mosaic_0001>

<bundles_post_ra>
// kernel: tpu_custom_call.1
= control target key start
LH: loop header
LB: loop body
LE: loop exit
PB: predicated region body
PF: predicated region fallthrough
CT: control target
= control target key end

     0   :  { %s2930_s0 = inlined_call_operand.vmem [shape: f32[16,32], index: 0, kind: input, shape index: {}]   ;;  %s2931_s1 = inlined_call_operand.vmem [shape: f32[120,32], index: 1, kind: input, shape index: {}]   ;;  %s2932_s2 = inlined_call_operand.vmem [shape: f32[16,120], index: 2, kind: input, shape index: {}]   ;;  %s2933_s3 = inlined_call_operand.vmem [shape: f32[120,16], index: 3, kind: input, shape index: {}]   ;;  %s2934_s4 = inlined_call_operand.vmem [shape: f32[120,32], index: 4, kind: input, shape index: {}]   ;;  %s2935_s5 = inlined_call_operand.vmem [shape: f32[1,32], index: 5, kind: input, shape index: {}]   ;;  %s2936_s6 = inlined_call_operand.vmem [shape: f32[1,32], index: 6, kind: input, shape index: {}]   ;;  %s2937_s7 = inlined_call_operand.vmem [shape: f32[32,96], index: 7, kind: input, shape index: {}]   ;;  %s2938_s8 = inlined_call_operand.vmem [shape: f32[1,96], index: 8, kind: input, shape index: {}]   ;;  %s2939_s9 = inlined_call_operand.vmem [shape: f32[1,32], index: 9, kind: input, shape index: {}]   ;;  %s2940_s10 = inlined_call_operand.vmem [shape: f32[1,32], index: 10, kind: input, shape index: {}]   ;;  %s2941_s11 = inlined_call_operand.vmem [shape: f32[32,32], index: 11, kind: input, shape index: {}]   ;;  %s2942_s12 = inlined_call_operand.vmem [shape: f32[1,32], index: 12, kind: input, shape index: {}]   ;;  %s2943_s13 = inlined_call_operand.vmem [shape: f32[1,32], index: 13, kind: input, shape index: {}]   ;;  %s2944_s14 = inlined_call_operand.vmem [shape: f32[1,32], index: 14, kind: input, shape index: {}]   ;;  %s2945_s15 = inlined_call_operand.vmem [shape: f32[32,64], index: 15, kind: input, shape index: {}]   ;;  %s2946_s16 = inlined_call_operand.vmem [shape: f32[1,64], index: 16, kind: input, shape index: {}]   ;;  %s2947_s17 = inlined_call_operand.vmem [shape: f32[64,32], index: 17, kind: input, shape index: {}]   ;;  %s2948_s18 = inlined_call_operand.vmem [shape: f32[1,32], index: 18, kind: input, shape index: {}]   ;;  %s2949_s19 = inlined_call_operand.hbm [shape: f32[16,32], index: 19, kind: output, shape index: {}]  }
   0x1   :  { %2954 = sst [smem:[#allocation5_spill]] %s2930_s0 }
   0x2   :  { %2955 = sst [smem:[#allocation6_spill]] %s2931_s1 }
   0x3   :  { %2956 = sst [smem:[#allocation7_spill]] %s2932_s2 }
   0x4   :  { %2957 = sst [smem:[#allocation8_spill]] %s2933_s3 }
   0x5   :  { %s2958_s20 = sld [smem:[#allocation5_spill]]  ;;  %vm67_vm0 = vcmask 261120  }
   0xb   :  { %v63_v0 = vld [vmem:[%s2958_s20] sm:$0xff]  ;;  %v64_v1 = vld [vmem:[%s2958_s20 + $0x8] sm:$0xff] }
   0xc   :  { %24 = vsyncpa [#allocation3], 0  ;;  %v68_v2 = vsel %vm67_vm0, %v63_v0, 0.0  ;;  %v71_v3 = vsel %vm67_vm0, %v64_v1, 0.0  ;;  %v114_v14 = vld [vmem:[%s2937_s7 + $0x18] sm:$0xff]  ;;  %v113_v15 = vld [vmem:[%s2937_s7 + $0x10] sm:$0xff] }
   0xd   :  { %69 = vadd.xlane.f32.xlu0 %v68_v2  ;;  %1813 = vmatprep.subr.mxu0 %v114_v14  ;;  %v112_v16 = vld [vmem:[%s2937_s7 + $0x8] sm:$0xff]  ;;  %v111_v17 = vld [vmem:[%s2937_s7] sm:$0xff]  ;;  %v2149_v34 = vmov 0.0   ;;  %vm2150_vm1 = vmmov 0   ;;  %s2151_s1 = smov 96   ;;  %s2959_s2 = sld [smem:[#allocation8_spill]] }
   0xe   :  { %1814 = vmatpush3.msra.mxu0 %v114_v14  ;;  %v1581_v25 = vld [vmem:[%s2935_s5] ss:$0 sm:$0xff]  ;;  %1824 = vmatprep.subr.mxu1 %v2149_v34  ;;  %vm259_vm2 = vcmask 130048   ;;  %s2960_s25 = sld [smem:[#allocation6_spill]]  ;;  %vm762_vm4 = vcmask 982016   ;;  %s2154_s22 = smov 126  }
   0xf   :  { %1815 = vmatprep.subr.mxu0 %v113_v15  ;;  %v1582_v27 = vld [vmem:[%s2936_s6] ss:$0 sm:$0xff]  ;;  %1828 = vmatprep.mubr.msk.f32.mxu1 %vm2150_vm1, %v2149_v34  ;;  %s2155_s23 = smov 125   ;;  %s2156_s24 = smov 124  }
  0x10   :  { %1816 = vmatpush3.msra.mxu0 %v113_v15  ;;  %v1583_v35 = vld [vmem:[%s2938_s8] ss:$0 sm:$0xff]  ;;  %s2152_s8 = smov 64   ;;  %s2157_s3 = smov 123  }
  0x11   :  { %72 = vadd.xlane.f32.xlu0 %v71_v3  ;;  %1817 = vmatprep.subr.mxu0 %v112_v16  ;;  %v2305_v37 = vld [vmem:[%s2939_s9] ss:$0 sm:$0xff]  ;;  %s2158_s26 = smov 122   ;;  %s2159_s27 = smov 121  }
  0x12   :  { %1818 = vmatpush3.msra.mxu0 %v112_v16  ;;  %v2540_v16 = vld [vmem:[%s2934_s4 + $0x70] sm:$0xff]  ;;  %s2961_s0 = sld [smem:[#allocation7_spill]] }
  0x13   :  { %1819 = vmatprep.subr.mxu0 %v111_v17  ;;  %v236_v43 = vld [vmem:[%s2959_s2] sm:$0xff]  ;;  %v237_v47 = vld [vmem:[%s2959_s2 + $0x8] sm:$0xff]  ;;  %v238_v50 = vld [vmem:[%s2959_s2 + $0x10] sm:$0xff] }
  0x14   :  { %1820 = vmatpush3.msra.mxu0 %v111_v17  ;;  %v635_v44 = vld [vmem:[%s2960_s25 + $0x70] sm:$0xff]  ;;  %v634_v46 = vld [vmem:[%s2960_s25 + $0x68] sm:$0xff]  ;;  %v633_v49 = vld [vmem:[%s2960_s25 + $0x60] sm:$0xff] }
  0x15   :  { %1873 = vmatprep.subr.mxu0 %v2149_v34  ;;  %v632_v52 = vld [vmem:[%s2960_s25 + $0x58] sm:$0xff]  ;;  %v631_v54 = vld [vmem:[%s2960_s25 + $0x50] sm:$0xff]  ;;  %v240_v55 = vld [vmem:[%s2959_s2 + $0x20] sm:$0xff] }
  0x16   :  { %v239_v53 = vld [vmem:[%s2959_s2 + $0x18] sm:$0xff]  ;;  %v630_v56 = vld [vmem:[%s2960_s25 + $0x48] sm:$0xff]  ;;  %v629_v58 = vld [vmem:[%s2960_s25 + $0x40] sm:$0xff] }
  0x17   :  { %v241_v57 = vld [vmem:[%s2959_s2 + $0x28] sm:$0xff]  ;;  %v242_v59 = vld [vmem:[%s2959_s2 + $0x30] sm:$0xff]  ;;  %v628_v60 = vld [vmem:[%s2960_s25 + $0x38] sm:$0xff] }
  0x18   :  { %v243_v61 = vld [vmem:[%s2959_s2 + $0x38] sm:$0xff]  ;;  %v627_v62 = vld [vmem:[%s2960_s25 + $0x30] sm:$0xff]  ;;  %v244_v63 = vld [vmem:[%s2959_s2 + $0x40] sm:$0xff] }
  0x19   :  { %v625_v2 = vld [vmem:[%s2960_s25 + $0x20] sm:$0xff]  ;;  %v246_v3 = vld [vmem:[%s2959_s2 + $0x50] sm:$0xff]  ;;  %v2546_v17 = vld [vmem:[%s2934_s4 + $0x68] sm:$0xff] }
  0x96   :  { %v70_v4 = vpop.xlane.xlu0 %69 }
  0x97   :  { %v75_v5 = vmul.f32 0.03125, %v70_v4  ;;  %v624_v4 = vld [vmem:[%s2960_s25 + $0x18] sm:$0xff] }
  0x99   :  { %v77_v6 = vsub.f32 %v63_v0, %v75_v5  ;;  %v626_v0 = vld [vmem:[%s2960_s25 + $0x28] sm:$0xff]  ;;  %v247_v5 = vld [vmem:[%s2959_s2 + $0x58] sm:$0xff] }
  0x9a   :  { %v73_v7 = vpop.xlane.xlu0 %72 }
  0x9b   :  { %v76_v8 = vmul.f32 0.03125, %v73_v7  ;;  %v79_v9 = vmul.f32 %v77_v6, %v77_v6  ;;  %v248_v7 = vld [vmem:[%s2959_s2 + $0x60] sm:$0xff] }
  0x9d   :  { %v78_v10 = vsub.f32 %v64_v1, %v76_v8  ;;  %v81_v11 = vsel %vm67_vm0, %v79_v9, 0.0  ;;  %v245_v1 = vld [vmem:[%s2959_s2 + $0x48] sm:$0xff] }
  0x9e   :  { %82 = vadd.xlane.f32.xlu1 %v81_v11  ;;  %v622_v8 = vld [vmem:[%s2960_s25 + $0x8] sm:$0xff]  ;;  %v250_v11 = vld [vmem:[%s2959_s2 + $0x70] sm:$0xff] }
  0x9f   :  { %v80_v12 = vmul.f32 %v78_v10, %v78_v10  ;;  %v249_v9 = vld [vmem:[%s2959_s2 + $0x68] sm:$0xff] }
  0xa1   :  { %v84_v13 = vsel %vm67_vm0, %v80_v12, 0.0  ;;  %v1587_v12 = vld [vmem:[%s2940_s10] ss:$0 sm:$0xff] }
  0xa2   :  { %85 = vadd.xlane.f32.xlu1 %v84_v13 }
 0x127   :  { %v83_v18 = vpop.xlane.xlu1 %82 }
 0x128   :  { %v87_v19 = vmul.f32 0.03125, %v83_v18  ;;  %v2553_v18 = vld [vmem:[%s2934_s4 + $0x60] sm:$0xff] }
 0x12a   :  { %v89_v20 = vadd.f32 1e-05, %v87_v19  ;;  %v2560_v19 = vld [vmem:[%s2934_s4 + $0x58] sm:$0xff] }
 0x12b   :  { %v86_v21 = vpop.xlane.xlu1 %85 }
 0x12c   :  { %2109 = vrsqrt.f32 %v89_v20  ;;  %v88_v22 = vmul.f32 0.03125, %v86_v21  ;;  %v2567_v20 = vld [vmem:[%s2934_s4 + $0x50] sm:$0xff]  ;;  %v2574_v21 = vld [vmem:[%s2934_s4 + $0x48] sm:$0xff] }
 0x12e   :  { %v90_v23 = vadd.f32 1e-05, %v88_v22  ;;  %v2581_v22 = vld [vmem:[%s2934_s4 + $0x40] sm:$0xff] }
 0x130   :  { %2111 = vrsqrt.f32 %v90_v23  ;;  %v2588_v23 = vld [vmem:[%s2934_s4 + $0x38] sm:$0xff] }
 0x139   :  { %v2110_v24 = vpop.eup %2109 }
 0x13a   :  { %v93_v26 = vmul.f32 %v2110_v24, %v77_v6  ;;  %v623_v6 = vld [vmem:[%s2960_s25 + $0x10] sm:$0xff] }
 0x13b   :  { %v2595_v24 = vld [vmem:[%s2934_s4 + $0x30] sm:$0xff] }
 0x13c   :  { %v101_v28 = vmul.f32 %v1581_v25, %v93_v26  ;;  %v2609_v26 = vld [vmem:[%s2934_s4 + $0x20] sm:$0xff] }
 0x13d   :  { %v2112_v29 = vpop.eup %2111 }
 0x13e   :  { %v94_v30 = vmul.f32 %v2112_v29, %v78_v10  ;;  %v109_v31 = vadd.f32 %v1582_v27, %v101_v28  ;;  %v621_v10 = vld [vmem:[%s2960_s25] sm:$0xff]  ;;  %v2623_v28 = vld [vmem:[%s2934_s4 + $0x10] sm:$0xff]  ;;  %v222_v29 = vld [vmem:[%s2934_s4 + $0x8] sm:$0xff] }
 0x140   :  { %v102_v32 = vmul.f32 %v1581_v25, %v94_v30  ;;  %1821 = vmatprep.mubr.msk.f32.mxu0 %vm67_vm0, %v109_v31  ;;  %v2602_v25 = vld [vmem:[%s2934_s4 + $0x28] sm:$0xff]  ;;  %v221_v30 = vld [vmem:[%s2934_s4] sm:$0xff] }
 0x142   :  { %v110_v33 = vadd.f32 %v1582_v27, %v102_v32  ;;  %v2616_v27 = vld [vmem:[%s2934_s4 + $0x18] sm:$0xff]  ;;  %s2153_s4 = smov 127  }
 0x144   :  { %1822 = vmatmul.mubr.msk.f32.vlgmr.msra.gmra.mxu0 %vm67_vm0, %v110_v33 }
 0x145   :  { %1877 = vmatprep.mubr.msk.f32.mxu0 %vm2150_vm1, %v2149_v34 }
 0x204   :  { %v1823_v36 = vpop.f32.mrf.mxu0 }
 0x205   :  { %v2307_v38 = vadd.f32 %v1823_v36, %v1583_v35 }
 0x206   :  { %v194_v39 = vpop.f32.mrf.mxu0 }
 0x207   :  { %v2311_v40 = vadd.f32 %v2305_v37, %v2307_v38  ;;  %v2313_v41 = vadd.f32 %v1583_v35, %v194_v39  ;;  %255 = vrot.lane.b32.xlu0 %v2307_v38, %s2151_s1  ;;  %v220_v14 = vadd.f32 %v1587_v12, %v2307_v38 }
 0x209   :  { %253 = vrot.lane.b32.xlu1 %v2313_v41, %s2151_s1  ;;  %v219_v13 = vadd.f32 %v1587_v12, %v2313_v41  ;;  %v210_v15 = vadd.f32 %v2305_v37, %v2313_v41 }
 0x20d   :  { %462 = vrot.lane.b32.xlu1 %v2307_v38, %s2152_s8 }
 0x211   :  { %460 = vrot.lane.b32.xlu1 %v2313_v41, %s2152_s8 }
 0x279   :  { %v256_v42 = vpop.permute.xlu0 %255 }
 0x27a   :  { %1825 = vmatpush3.msra.mxu1 %v256_v42 }
 0x27b   :  { %1826 = vmatprep.subr.mxu1 %v2149_v34  ;;  %v254_v45 = vpop.permute.xlu1 %253 }
 0x27c   :  { %1827 = vmatpush3.msra.mxu1 %v254_v45 }
 0x27d   :  { %1829 = vmatmul.mubr.msk.f32.vlgmr.msra.gmra.mxu1 %vm259_vm2, %v236_v43  ;;  %1922 = vmatprep.subr.msk.mxu1 %vm67_vm0, %v635_v44 }
 0x27e   :  { %1923 = vmatpush3.xpose.msk.msra.mxu1 %vm67_vm0, %v635_v44  ;;  %1831 = vmatprep.mubr.msk.f32.mxu1 %vm2150_vm1, %v2149_v34 }
 0x27f   :  { %v463_v48 = vpop.permute.xlu1 %462  ;;  %1924 = vmatprep.subr.msk.mxu1 %vm67_vm0, %v634_v46 }
 0x280   :  { %1874 = vmatpush3.msra.mxu0 %v463_v48 }
 0x281   :  { %1832 = vmatmul.mubr.msk.f32.gmra.mxu1 %vm259_vm2, %v237_v47  ;;  %1875 = vmatprep.subr.mxu0 %v2149_v34 }
 0x282   :  { %1925 = vmatpush3.xpose.msk.msra.mxu1 %vm67_vm0, %v634_v46  ;;  %1834 = vmatprep.mubr.msk.f32.mxu1 %vm2150_vm1, %v2149_v34 }
 0x283   :  { %v461_v51 = vpop.permute.xlu1 %460  ;;  %1926 = vmatprep.subr.msk.mxu1 %vm67_vm0, %v633_v49 }
 0x284   :  { %1876 = vmatpush3.msra.mxu0 %v461_v51 }
 0x285   :  { %1835 = vmatmul.mubr.msk.f32.gmra.mxu1 %vm259_vm2, %v238_v50  ;;  %1878 = vmatmul.mubr.msk.f32.vlgmr.msra.gmra.mxu0 %vm259_vm2, %v236_v43 }
 0x286   :  { %1927 = vmatpush3.xpose.msk.msra.mxu1 %vm67_vm0, %v633_v49  ;;  %1837 = vmatprep.mubr.msk.f32.mxu1 %vm2150_vm1, %v2149_v34 }
 0x287   :  { %1880 = vmatprep.mubr.msk.f32.mxu0 %vm2150_vm1, %v2149_v34  ;;  %1928 = vmatprep.subr.msk.mxu1 %vm67_vm0, %v632_v52 }
 0x289   :  { %1838 = vmatmul.mubr.msk.f32.gmra.mxu1 %vm259_vm2, %v239_v53  ;;  %1881 = vmatmul.mubr.msk.f32.gmra.mxu0 %vm259_vm2, %v237_v47 }
 0x28a   :  { %1929 = vmatpush3.xpose.msk.msra.mxu1 %vm67_vm0, %v632_v52  ;;  %1840 = vmatprep.mubr.msk.f32.mxu1 %vm2150_vm1, %v2149_v34 }
 0x28b   :  { %1883 = vmatprep.mubr.msk.f32.mxu0 %vm2150_vm1, %v2149_v34  ;;  %1930 = vmatprep.subr.msk.mxu1 %vm67_vm0, %v631_v54 }
 0x28d   :  { %1841 = vmatmul.mubr.msk.f32.gmra.mxu1 %vm259_vm2, %v240_v55  ;;  %1884 = vmatmul.mubr.msk.f32.gmra.mxu0 %vm259_vm2, %v238_v50 }
 0x28e   :  { %1931 = vmatpush3.xpose.msk.msra.mxu1 %vm67_vm0, %v631_v54  ;;  %1843 = vmatprep.mubr.msk.f32.mxu1 %vm2150_vm1, %v2149_v34 }
 0x28f   :  { %1886 = vmatprep.mubr.msk.f32.mxu0 %vm2150_vm1, %v2149_v34  ;;  %1932 = vmatprep.subr.msk.mxu1 %vm67_vm0, %v630_v56 }
 0x291   :  { %1844 = vmatmul.mubr.msk.f32.gmra.mxu1 %vm259_vm2, %v241_v57  ;;  %1887 = vmatmul.mubr.msk.f32.gmra.mxu0 %vm259_vm2, %v239_v53 }
 0x292   :  { %1933 = vmatpush3.xpose.msk.msra.mxu1 %vm67_vm0, %v630_v56  ;;  %1846 = vmatprep.mubr.msk.f32.mxu1 %vm2150_vm1, %v2149_v34 }
 0x293   :  { %1889 = vmatprep.mubr.msk.f32.mxu0 %vm2150_vm1, %v2149_v34  ;;  %1934 = vmatprep.subr.msk.mxu1 %vm67_vm0, %v629_v58 }
 0x295   :  { %1847 = vmatmul.mubr.msk.f32.gmra.mxu1 %vm259_vm2, %v242_v59  ;;  %1890 = vmatmul.mubr.msk.f32.gmra.mxu0 %vm259_vm2, %v240_v55 }
 0x296   :  { %1935 = vmatpush3.xpose.msk.msra.mxu1 %vm67_vm0, %v629_v58  ;;  %1849 = vmatprep.mubr.msk.f32.mxu1 %vm2150_vm1, %v2149_v34 }
 0x297   :  { %1892 = vmatprep.mubr.msk.f32.mxu0 %vm2150_vm1, %v2149_v34  ;;  %1936 = vmatprep.subr.msk.mxu1 %vm67_vm0, %v628_v60 }
 0x299   :  { %1850 = vmatmul.mubr.msk.f32.gmra.mxu1 %vm259_vm2, %v243_v61  ;;  %1893 = vmatmul.mubr.msk.f32.gmra.mxu0 %vm259_vm2, %v241_v57 }
 0x29a   :  { %1937 = vmatpush3.xpose.msk.msra.mxu1 %vm67_vm0, %v628_v60  ;;  %1852 = vmatprep.mubr.msk.f32.mxu1 %vm2150_vm1, %v2149_v34 }
 0x29b   :  { %1895 = vmatprep.mubr.msk.f32.mxu0 %vm2150_vm1, %v2149_v34  ;;  %1938 = vmatprep.subr.msk.mxu1 %vm67_vm0, %v627_v62 }
 0x29d   :  { %1853 = vmatmul.mubr.msk.f32.gmra.mxu1 %vm259_vm2, %v244_v63  ;;  %1896 = vmatmul.mubr.msk.f32.gmra.mxu0 %vm259_vm2, %v242_v59 }
 0x29e   :  { %1939 = vmatpush3.xpose.msk.msra.mxu1 %vm67_vm0, %v627_v62  ;;  %1855 = vmatprep.mubr.msk.f32.mxu1 %vm2150_vm1, %v2149_v34 }
 0x29f   :  { %1898 = vmatprep.mubr.msk.f32.mxu0 %vm2150_vm1, %v2149_v34  ;;  %1940 = vmatprep.subr.msk.mxu1 %vm67_vm0, %v626_v0 }
 0x2a1   :  { %1856 = vmatmul.mubr.msk.f32.gmra.mxu1 %vm259_vm2, %v245_v1  ;;  %1899 = vmatmul.mubr.msk.f32.gmra.mxu0 %vm259_vm2, %v243_v61 }
 0x2a2   :  { %1941 = vmatpush3.xpose.msk.msra.mxu1 %vm67_vm0, %v626_v0  ;;  %1858 = vmatprep.mubr.msk.f32.mxu1 %vm2150_vm1, %v2149_v34  ;;  %v765_v0 = vlaneseq }
 0x2a3   :  { %1901 = vmatprep.mubr.msk.f32.mxu0 %vm2150_vm1, %v2149_v34  ;;  %1942 = vmatprep.subr.msk.mxu1 %vm67_vm0, %v625_v2 }
 0x2a5   :  { %1859 = vmatmul.mubr.msk.f32.gmra.mxu1 %vm259_vm2, %v246_v3  ;;  %1902 = vmatmul.mubr.msk.f32.gmra.mxu0 %vm259_vm2, %v244_v63 }
 0x2a6   :  { %1943 = vmatpush3.xpose.msk.msra.mxu1 %vm67_vm0, %v625_v2  ;;  %1861 = vmatprep.mubr.msk.f32.mxu1 %vm2150_vm1, %v2149_v34 }
 0x2a7   :  { %1904 = vmatprep.mubr.msk.f32.mxu0 %vm2150_vm1, %v2149_v34  ;;  %1944 = vmatprep.subr.msk.mxu1 %vm67_vm0, %v624_v4 }
 0x2a9   :  { %1862 = vmatmul.mubr.msk.f32.gmra.mxu1 %vm259_vm2, %v247_v5  ;;  %1905 = vmatmul.mubr.msk.f32.gmra.mxu0 %vm259_vm2, %v245_v1 }
 0x2aa   :  { %1945 = vmatpush3.xpose.msk.msra.mxu1 %vm67_vm0, %v624_v4  ;;  %1864 = vmatprep.mubr.msk.f32.mxu1 %vm2150_vm1, %v2149_v34 }
 0x2ab   :  { %1907 = vmatprep.mubr.msk.f32.mxu0 %vm2150_vm1, %v2149_v34  ;;  %1946 = vmatprep.subr.msk.mxu1 %vm67_vm0, %v623_v6 }
 0x2ad   :  { %1865 = vmatmul.mubr.msk.f32.gmra.mxu1 %vm259_vm2, %v248_v7  ;;  %1908 = vmatmul.mubr.msk.f32.gmra.mxu0 %vm259_vm2, %v246_v3  ;;  %v766_v3 = vshrl.u32 %v765_v0, 7 }
 0x2ae   :  { %1947 = vmatpush3.xpose.msk.msra.mxu1 %vm67_vm0, %v623_v6  ;;  %1867 = vmatprep.mubr.msk.f32.mxu1 %vm2150_vm1, %v2149_v34 }
 0x2af   :  { %1910 = vmatprep.mubr.msk.f32.mxu0 %vm2150_vm1, %v2149_v34  ;;  %1948 = vmatprep.subr.msk.mxu1 %vm67_vm0, %v622_v8  ;;  %v767_v6 = vadd.s32 8, %v766_v3 }
 0x2b1   :  { %1868 = vmatmul.mubr.msk.f32.gmra.mxu1 %vm259_vm2, %v249_v9  ;;  %1911 = vmatmul.mubr.msk.f32.gmra.mxu0 %vm259_vm2, %v247_v5 }
 0x2b2   :  { %1949 = vmatpush3.xpose.msk.msra.mxu1 %vm67_vm0, %v622_v8  ;;  %1870 = vmatprep.mubr.msk.f32.mxu1 %vm2150_vm1, %v2149_v34 }
 0x2b3   :  { %1913 = vmatprep.mubr.msk.f32.mxu0 %vm2150_vm1, %v2149_v34  ;;  %1950 = vmatprep.subr.msk.mxu1 %vm67_vm0, %v621_v10 }
 0x2b5   :  { %1871 = vmatmul.mubr.msk.f32.gmra.mxu1 %vm259_vm2, %v250_v11  ;;  %1914 = vmatmul.mubr.msk.f32.gmra.mxu0 %vm259_vm2, %v248_v7 }
 0x2b6   :  { %1951 = vmatpush3.xpose.msk.msra.mxu1 %vm67_vm0, %v621_v10  ;;  %1952 = vmatprep.mubr.msk.f32.mxu1 %vm67_vm0, %v219_v13  ;;  %v2664_v10 = vand.u32 7, %v767_v6  ;;  %v2666_v13 = vand.u32 7, %v766_v3 }
 0x2b7   :  { %1916 = vmatprep.mubr.msk.f32.mxu0 %vm2150_vm1, %v2149_v34  ;;  %1988 = vmatprep.subr.mxu1 %v2540_v16 }
 0x2b8   :  { %vm803_vm3 = vcmp.eq.s32.totalorder %v2664_v10, 6  ;;  %vm802_vm5 = vcmp.eq.s32.totalorder %v2666_v13, 6  ;;  %vm821_vm6 = vcmp.eq.s32.totalorder %v2664_v10, 5  ;;  %vm793_vm7 = vcmp.eq.s32.totalorder %v2664_v10, 7 }
 0x2b9   :  { %1917 = vmatmul.mubr.msk.f32.gmra.mxu0 %vm259_vm2, %v249_v9  ;;  %1953 = vmatmul.mubr.msk.f32.vlgmr.msra.gmra.mxu1 %vm67_vm0, %v220_v14  ;;  %vm792_vm8 = vcmp.eq.s32.totalorder %v2666_v13, 7  ;;  %vm820_vm9 = vcmp.eq.s32.totalorder %v2666_v13, 5  ;;  %vm839_vm10 = vcmp.eq.s32.totalorder %v2664_v10, 4  ;;  %vm838_vm11 = vcmp.eq.s32.totalorder %v2666_v13, 4 }
 0x2ba   :  { %1919 = vmatprep.mubr.msk.f32.mxu0 %vm2150_vm1, %v2149_v34  ;;  %1989 = vmatpush3.msra.mxu1 %v2540_v16  ;;  %v1639_v0 = vsel %vm820_vm9, 1.0, %v2149_v34  ;;  %vm857_vm12 = vcmp.eq.s32.totalorder %v2664_v10, 3  ;;  %vm856_vm13 = vcmp.eq.s32.totalorder %v2666_v13, 3  ;;  %vm875_vm14 = vcmp.eq.s32.totalorder %v2664_v10, 2 }
 0x2bb   :  { %1990 = vmatprep.subr.mxu1 %v2546_v17  ;;  %vm874_vm15 = vcmp.eq.s32.totalorder %v2666_v13, 2  ;;  %vm893_vm1 = vcmp.eq.s32.totalorder %v2664_v10, 1 }
 0x2bc   :  { %1991 = vmatpush3.msra.mxu1 %v2546_v17 }
 0x2bd   :  { %1920 = vmatmul.mubr.msk.f32.gmra.mxu0 %vm259_vm2, %v250_v11  ;;  %1992 = vmatprep.subr.mxu1 %v2553_v18  ;;  %vm892_vm2 = vcmp.eq.s32.totalorder %v2666_v13, 1 }
 0x2be   :  { %1985 = vmatprep.mubr.msk.f32.mxu0 %vm67_vm0, %v210_v15  ;;  %1993 = vmatpush3.msra.mxu1 %v2553_v18 }
 0x2bf   :  { %1994 = vmatprep.subr.mxu1 %v2560_v19 }
 0x2c0   :  { %1995 = vmatpush3.msra.mxu1 %v2560_v19 }
 0x2c1   :  { %1996 = vmatprep.subr.mxu1 %v2567_v20 }
 0x2c2   :  { %1997 = vmatpush3.msra.mxu1 %v2567_v20 }
 0x2c3   :  { %1998 = vmatprep.subr.mxu1 %v2574_v21 }
 0x2c4   :  { %1999 = vmatpush3.msra.mxu1 %v2574_v21 }
 0x2c5   :  { %2000 = vmatprep.subr.mxu1 %v2581_v22 }
 0x2c6   :  { %2001 = vmatpush3.msra.mxu1 %v2581_v22 }
 0x2c7   :  { %2002 = vmatprep.subr.mxu1 %v2588_v23 }
 0x2c8   :  { %2003 = vmatpush3.msra.mxu1 %v2588_v23 }
 0x2c9   :  { %2004 = vmatprep.subr.mxu1 %v2595_v24 }
 0x2ca   :  { %2005 = vmatpush3.msra.mxu1 %v2595_v24 }
 0x2cb   :  { %2006 = vmatprep.subr.mxu1 %v2602_v25 }
 0x2cc   :  { %2007 = vmatpush3.msra.mxu1 %v2602_v25 }
 0x2cd   :  { %2008 = vmatprep.subr.mxu1 %v2609_v26 }
 0x2ce   :  { %2009 = vmatpush3.msra.mxu1 %v2609_v26 }
 0x2cf   :  { %2010 = vmatprep.subr.mxu1 %v2616_v27 }
 0x2d0   :  { %2011 = vmatpush3.msra.mxu1 %v2616_v27 }
 0x2d1   :  { %2012 = vmatprep.subr.mxu1 %v2623_v28 }
 0x2d2   :  { %2013 = vmatpush3.msra.mxu1 %v2623_v28 }
 0x2d3   :  { %2014 = vmatprep.subr.mxu1 %v222_v29 }
 0x2d4   :  { %2015 = vmatpush3.msra.mxu1 %v222_v29 }
 0x2d5   :  { %2016 = vmatprep.subr.mxu1 %v221_v30 }
 0x2d6   :  { %2017 = vmatpush3.msra.mxu1 %v221_v30 }
 0x33d   :  { %v371_v31 = vpop.f32.mrf.mxu1 }
 0x33e   :  { %v2634_v32 = vmul.f32 %v371_v31, %v221_v30 }
 0x33f   :  { %v1830_v33 = vpop.f32.mrf.mxu1 }
 0x341   :  { %v376_v35 = vpop.f32.mrf.mxu1 }
 0x342   :  { %v2636_v36 = vmul.f32 %v376_v35, %v222_v29  ;;  %v1638_v35 = vsel %vm803_vm3, 1.0, %v2149_v34  ;;  %vm911_vm3 = vcmp.eq.s32.totalorder %v2664_v10, 0 }
 0x343   :  { %v1833_v37 = vpop.f32.mrf.mxu1 }
 0x345   :  { %v2638_v38 = vpop.f32.mrf.mxu1  ;;  %v532_v39 = vpop.f32.mrf.mxu0 }
 0x346   :  { %v2640_v41 = vmul.f32 %v532_v39, %v221_v30 }
 0x347   :  { %v1836_v42 = vpop.f32.mrf.mxu1  ;;  %v1879_v43 = vpop.f32.mrf.mxu0 }
 0x348   :  { %v1637_v43 = vsel %vm802_vm5, 1.0, %v2149_v34  ;;  %vm910_vm5 = vcmp.eq.s32.totalorder %v2666_v13, 0 }
 0x349   :  { %v2642_v44 = vpop.f32.mrf.mxu1  ;;  %v537_v45 = vpop.f32.mrf.mxu0 }
 0x34a   :  { %v2644_v46 = vmul.f32 %v537_v45, %v222_v29 }
 0x34b   :  { %v1839_v47 = vpop.f32.mrf.mxu1  ;;  %v1882_v48 = vpop.f32.mrf.mxu0 }
 0x34d   :  { %v2646_v49 = vpop.f32.mrf.mxu1  ;;  %v2648_v50 = vpop.f32.mrf.mxu0 }
 0x34f   :  { %v1842_v51 = vpop.f32.mrf.mxu1  ;;  %v1885_v52 = vpop.f32.mrf.mxu0 }
 0x350   :  { %v1640_v51 = vsel %vm821_vm6, 1.0, %v2149_v34 }
 0x351   :  { %v2650_v53 = vpop.f32.mrf.mxu1  ;;  %v2662_v8 = vpop.f32.mrf.mxu0 }
 0x353   :  { %v1845_v54 = vpop.f32.mrf.mxu1  ;;  %v1888_v11 = vpop.f32.mrf.mxu0 }
 0x355   :  { %v2652_v55 = vpop.f32.mrf.mxu1  ;;  %v2668_v14 = vpop.f32.mrf.mxu0 }
 0x357   :  { %v1848_v56 = vpop.f32.mrf.mxu1  ;;  %v1891_v30 = vpop.f32.mrf.mxu0 }
 0x358   :  { %v1636_v56 = vsel %vm793_vm7, 1.0, %v2149_v34  ;;  %v1644_v30 = vsel %vm857_vm12, 1.0, %v2149_v34 }
 0x359   :  { %v2654_v57 = vpop.f32.mrf.mxu1  ;;  %v2677_v37 = vpop.f32.mrf.mxu0 }
 0x35b   :  { %v1851_v58 = vpop.f32.mrf.mxu1  ;;  %v1894_v45 = vpop.f32.mrf.mxu0 }
 0x35c   :  { %v1635_v58 = vsel %vm792_vm8, 1.0, %v2149_v34  ;;  %v1646_v45 = vsel %vm875_vm14, 1.0, %v2149_v34 }
 0x35d   :  { %v2656_v59 = vpop.f32.mrf.mxu1 }
 0x35f   :  { %v1854_v60 = vpop.f32.mrf.mxu1 }
 0x360   :  { %v2696_v60 = vpop.f32.mrf.mxu0 }
 0x361   :  { %v2658_v61 = vpop.f32.mrf.mxu1 }
 0x363   :  { %v1857_v62 = vpop.f32.mrf.mxu1 }
 0x365   :  { %v2660_v63 = vpop.f32.mrf.mxu1 }
 0x367   :  { %v1860_v1 = vpop.f32.mrf.mxu1 }
 0x368   :  { %v1897_v1 = vpop.f32.mrf.mxu0 }
 0x369   :  { %v426_v2 = vpop.f32.mrf.mxu1  ;;  %v1647_v1 = vsel %vm892_vm2, 1.0, %v2149_v34 }
 0x36a   :  { %v456_v6 = vmul.f32 %v426_v2, %v2560_v19 }
 0x36b   :  { %v1863_v4 = vpop.f32.mrf.mxu1 }
 0x36d   :  { %v431_v5 = vpop.f32.mrf.mxu1 }
 0x36e   :  { %v457_v52 = vmul.f32 %v431_v5, %v2553_v18 }
 0x36f   :  { %v1866_v7 = vpop.f32.mrf.mxu1 }
 0x370   :  { %v1642_v7 = vsel %vm839_vm10, 1.0, %v2149_v34 }
 0x371   :  { %v436_v9 = vpop.f32.mrf.mxu1 }
 0x372   :  { %v458_v33 = vmul.f32 %v436_v9, %v2546_v17  ;;  %v2713_v9 = vpop.f32.mrf.mxu0 }
 0x373   :  { %v1869_v12 = vpop.f32.mrf.mxu1 }
 0x374   :  { %v1641_v12 = vsel %vm838_vm11, 1.0, %v2149_v34 }
 0x375   :  { %v441_v15 = vpop.f32.mrf.mxu1 }
 0x376   :  { %v459_v29 = vmul.f32 %v441_v15, %v2540_v16  ;;  %v1900_v15 = vpop.f32.mrf.mxu0 }
 0x377   :  { %v1872_v31 = vpop.f32.mrf.mxu1 }
 0x378   :  { %1955 = vmatprep.subr.msk.mxu0 %vm67_vm0, %v459_v29  ;;  %v2725_v31 = vpop.f32.mrf.mxu0 }
 0x379   :  { %v1954_v39 = vpop.f32.mrf.mxu1  ;;  %1956 = vmatpush3.xpose.msk.msra.mxu0 %vm67_vm0, %v459_v29  ;;  %v455_v29 = vmul.f32 %v2660_v63, %v2567_v20 }
 0x37a   :  { %v2683_v42 = vsel %vm762_vm4, %v1954_v39, 0.0  ;;  %1957 = vmatprep.subr.msk.mxu0 %vm67_vm0, %v458_v33  ;;  %v1903_v39 = vpop.f32.mrf.mxu0 }
 0x37b   :  { %v753_v47 = vpop.f32.mrf.mxu1  ;;  %v809_v48 = vmul.f32 %v1638_v35, %v2683_v42  ;;  %v827_v3 = vmul.f32 %v1640_v51, %v2683_v42  ;;  %v2706_v4 = vmul.f32 %v1636_v56, %v2683_v42  ;;  %v845_v2 = vmul.f32 %v1642_v7, %v2683_v42 }
 0x37c   :  { %v2692_v54 = vsel %vm762_vm4, %v753_v47, 0.0  ;;  %v1643_v35 = vsel %vm856_vm13, 1.0, %v2149_v34  ;;  %v863_v63 = vmul.f32 %v1644_v30, %v2683_v42  ;;  %v2737_v47 = vpop.f32.mrf.mxu0  ;;  %v1645_v51 = vsel %vm874_vm15, 1.0, %v2149_v34 }
 0x37d   :  { %1958 = vmatpush3.xpose.msk.msra.mxu0 %vm67_vm0, %v458_v33  ;;  %814 = vrot.lane.b32.xlu1 %v809_v48, %s2153_s4  ;;  %v808_v62 = vmul.f32 %v1637_v43, %v2692_v54  ;;  %v2709_v5 = vmul.f32 %v1635_v58, %v2692_v54  ;;  %v826_v11 = vmul.f32 %v1639_v0, %v2692_v54  ;;  %v1648_v58 = vsel %vm893_vm1, 1.0, %v2149_v34 }
 0x37e   :  { %1959 = vmatprep.subr.msk.mxu0 %vm67_vm0, %v457_v52  ;;  %v844_v33 = vmul.f32 %v1641_v12, %v2692_v54  ;;  %v454_v43 = vmul.f32 %v2658_v61, %v2574_v21  ;;  %v862_v48 = vmul.f32 %v1643_v35, %v2692_v54  ;;  %v881_v61 = vmul.f32 %v1646_v45, %v2683_v42 }
 0x37f   :  { %812 = vrot.lane.b32.xlu0 %v808_v62, %s2153_s4  ;;  %v453_v56 = vmul.f32 %v2656_v59, %v2581_v22  ;;  %v880_v0 = vmul.f32 %v1645_v51, %v2692_v54  ;;  %v899_v59 = vmul.f32 %v1648_v58, %v2683_v42  ;;  %v1650_v7 = vsel %vm911_vm3, 1.0, %v2149_v34 }
 0x380   :  { %v898_v10 = vmul.f32 %v1647_v1, %v2692_v54  ;;  %v1649_v12 = vsel %vm910_vm5, 1.0, %v2149_v34  ;;  %v917_v13 = vmul.f32 %v1650_v7, %v2683_v42  ;;  %v450_v34 = vmul.f32 %v2650_v53, %v2602_v25 }
 0x381   :  { %1960 = vmatpush3.xpose.msk.msra.mxu0 %vm67_vm0, %v457_v52  ;;  %832 = vrot.lane.b32.xlu1 %v827_v3, %s2154_s22  ;;  %v1906_v52 = vpop.f32.mrf.mxu0  ;;  %v449_v42 = vmul.f32 %v2646_v49, %v2609_v26  ;;  %v448_v39 = vmul.f32 %v2642_v44, %v2616_v27  ;;  %v447_v53 = vmul.f32 %v2638_v38, %v2623_v28 }
 0x382   :  { %1961 = vmatprep.subr.msk.mxu0 %vm67_vm0, %v456_v6 }
 0x383   :  { %830 = vrot.lane.b32.xlu0 %v826_v11, %s2154_s22  ;;  %v2749_v62 = vpop.f32.mrf.mxu0 }
 0x385   :  { %1962 = vmatpush3.xpose.msk.msra.mxu0 %vm67_vm0, %v456_v6  ;;  %850 = vrot.lane.b32.xlu1 %v845_v2, %s2155_s23  ;;  %v1909_v3 = vpop.f32.mrf.mxu0  ;;  %v452_v6 = vmul.f32 %v2654_v57, %v2588_v23  ;;  %v451_v57 = vmul.f32 %v2652_v55, %v2595_v24 }
 0x386   :  { %1963 = vmatprep.subr.msk.mxu0 %vm67_vm0, %v455_v29 }
 0x387   :  { %848 = vrot.lane.b32.xlu0 %v844_v33, %s2155_s23  ;;  %v587_v11 = vpop.f32.mrf.mxu0 }
 0x389   :  { %1964 = vmatpush3.xpose.msk.msra.mxu0 %vm67_vm0, %v455_v29  ;;  %868 = vrot.lane.b32.xlu1 %v863_v63, %s2156_s24  ;;  %v1912_v15 = vpop.f32.mrf.mxu0  ;;  %v916_v29 = vmul.f32 %v1649_v12, %v2692_v54  ;;  %v617_v63 = vmul.f32 %v587_v11, %v2560_v19  ;;  %v611_v19 = vmul.f32 %v2677_v37, %v2602_v25  ;;  %v1056_v11 = vld [vmem:[%s2961_s0] sm:$0xff] }
 0x38a   :  { %1965 = vmatprep.subr.msk.mxu0 %vm67_vm0, %v454_v43 }
 0x38b   :  { %866 = vrot.lane.b32.xlu0 %v862_v48, %s2156_s24  ;;  %v592_v2 = vpop.f32.mrf.mxu0 }
 0x38c   :  { %v618_v49 = vmul.f32 %v592_v2, %v2553_v18  ;;  %v612_v18 = vmul.f32 %v2696_v60, %v2595_v24 }
 0x38d   :  { %1966 = vmatpush3.xpose.msk.msra.mxu0 %vm67_vm0, %v454_v43  ;;  %886 = vrot.lane.b32.xlu1 %v881_v61, %s2157_s3  ;;  %v1915_v30 = vpop.f32.mrf.mxu0 }
 0x38e   :  { %1967 = vmatprep.subr.msk.mxu0 %vm67_vm0, %v453_v56 }
 0x38f   :  { %884 = vrot.lane.b32.xlu0 %v880_v0, %s2157_s3  ;;  %v597_v33 = vpop.f32.mrf.mxu0 }
 0x390   :  { %v619_v38 = vmul.f32 %v597_v33, %v2546_v17  ;;  %v613_v17 = vmul.f32 %v2713_v9, %v2588_v23 }
 0x391   :  { %1968 = vmatpush3.xpose.msk.msra.mxu0 %vm67_vm0, %v453_v56  ;;  %904 = vrot.lane.b32.xlu1 %v899_v59, %s2158_s26  ;;  %v1918_v55 = vpop.f32.mrf.mxu0 }
 0x392   :  { %1969 = vmatprep.subr.msk.mxu0 %vm67_vm0, %v452_v6 }
 0x393   :  { %902 = vrot.lane.b32.xlu0 %v898_v10, %s2158_s26  ;;  %v602_v35 = vpop.f32.mrf.mxu0 }
 0x394   :  { %v620_v44 = vmul.f32 %v602_v35, %v2540_v16  ;;  %v615_v16 = vmul.f32 %v2737_v47, %v2574_v21  ;;  %v609_v21 = vmul.f32 %v2662_v8, %v2616_v27 }
 0x395   :  { %1970 = vmatpush3.xpose.msk.msra.mxu0 %vm67_vm0, %v452_v6  ;;  %922 = vrot.lane.b32.xlu1 %v917_v13, %s2159_s27  ;;  %v1921_v54 = vpop.f32.mrf.mxu0 }
 0x396   :  { %1971 = vmatprep.subr.msk.mxu0 %vm67_vm0, %v451_v57  ;;  %v1235_v54 = vld [vmem:[%s2941_s11 + $0x18] sm:$0xff] }
 0x397   :  { %920 = vrot.lane.b32.xlu0 %v916_v29, %s2159_s27  ;;  %2054 = vmatprep.subr.mxu1 %v1235_v54 }
 0x399   :  { %1972 = vmatpush3.xpose.msk.msra.mxu0 %vm67_vm0, %v451_v57 }
 0x39a   :  { %1973 = vmatprep.subr.msk.mxu0 %vm67_vm0, %v450_v34 }
 0x39d   :  { %1974 = vmatpush3.xpose.msk.msra.mxu0 %vm67_vm0, %v450_v34 }
 0x39e   :  { %1975 = vmatprep.subr.msk.mxu0 %vm67_vm0, %v449_v42 }
 0x3a1   :  { %1976 = vmatpush3.xpose.msk.msra.mxu0 %vm67_vm0, %v449_v42 }
 0x3a2   :  { %1977 = vmatprep.subr.msk.mxu0 %vm67_vm0, %v448_v39 }
 0x3a5   :  { %1978 = vmatpush3.xpose.msk.msra.mxu0 %vm67_vm0, %v448_v39  ;;  %v1234_v39 = vld [vmem:[%s2941_s11 + $0x10] sm:$0xff] }
 0x3a6   :  { %1979 = vmatprep.subr.msk.mxu0 %vm67_vm0, %v447_v53 }
 0x3a9   :  { %1980 = vmatpush3.xpose.msk.msra.mxu0 %vm67_vm0, %v447_v53  ;;  %v1233_v53 = vld [vmem:[%s2941_s11 + $0x8] sm:$0xff] }
 0x3aa   :  { %1981 = vmatprep.subr.msk.mxu0 %vm67_vm0, %v2636_v36 }
 0x3ad   :  { %1982 = vmatpush3.xpose.msk.msra.mxu0 %vm67_vm0, %v2636_v36  ;;  %v616_v36 = vmul.f32 %v2749_v62, %v2567_v20  ;;  %v610_v20 = vmul.f32 %v2668_v14, %v2609_v26 }
 0x3ae   :  { %1983 = vmatprep.subr.msk.mxu0 %vm67_vm0, %v2634_v32 }
 0x3b1   :  { %1984 = vmatpush3.xpose.msk.msra.mxu0 %vm67_vm0, %v2634_v32 }
 0x3b2   :  { %2021 = vmatprep.subr.mxu0 %v620_v44 }
 0x3b4   :  { %1986 = vmatmul.mubr.msk.f32.vlgmr.msra.gmra.mxu0 %vm67_vm0, %v2311_v40  ;;  %v614_v40 = vmul.f32 %v2725_v31, %v2581_v22  ;;  %v608_v22 = vmul.f32 %v2648_v50, %v2623_v28 }
 0x3b5   :  { %2022 = vmatpush3.msra.mxu0 %v620_v44  ;;  %v1232_v44 = vld [vmem:[%s2941_s11] sm:$0xff] }
 0x3b6   :  { %2023 = vmatprep.subr.mxu0 %v619_v38 }
 0x3b7   :  { %2024 = vmatpush3.msra.mxu0 %v619_v38 }
 0x3b8   :  { %2025 = vmatprep.subr.mxu0 %v618_v49 }
 0x3b9   :  { %2026 = vmatpush3.msra.mxu0 %v618_v49 }
 0x3ba   :  { %2027 = vmatprep.subr.mxu0 %v617_v63 }
 0x3bb   :  { %2028 = vmatpush3.msra.mxu0 %v617_v63 }
 0x3bc   :  { %2029 = vmatprep.subr.mxu0 %v616_v36 }
 0x3bd   :  { %2030 = vmatpush3.msra.mxu0 %v616_v36 }
 0x3be   :  { %2031 = vmatprep.subr.mxu0 %v615_v16 }
 0x3bf   :  { %2032 = vmatpush3.msra.mxu0 %v615_v16 }
 0x3c0   :  { %2033 = vmatprep.subr.mxu0 %v614_v40 }
 0x3c1   :  { %2034 = vmatpush3.msra.mxu0 %v614_v40 }
 0x3c2   :  { %2035 = vmatprep.subr.mxu0 %v613_v17 }
 0x3c3   :  { %2036 = vmatpush3.msra.mxu0 %v613_v17 }
 0x3c4   :  { %2037 = vmatprep.subr.mxu0 %v612_v18 }
 0x3c5   :  { %2038 = vmatpush3.msra.mxu0 %v612_v18 }
 0x3c6   :  { %2039 = vmatprep.subr.mxu0 %v611_v19 }
 0x3c7   :  { %2040 = vmatpush3.msra.mxu0 %v611_v19 }
 0x3c8   :  { %2041 = vmatprep.subr.mxu0 %v610_v20 }
 0x3c9   :  { %2042 = vmatpush3.msra.mxu0 %v610_v20  ;;  %v1672_v20 = vld [vmem:[%s2942_s12] ss:$0 sm:$0xff] }
 0x3ca   :  { %2043 = vmatprep.subr.mxu0 %v609_v21 }
 0x3cb   :  { %2044 = vmatpush3.msra.mxu0 %v609_v21 }
 0x3cc   :  { %2045 = vmatprep.subr.mxu0 %v608_v22 }
 0x3cd   :  { %2046 = vmatpush3.msra.mxu0 %v608_v22 }
 0x3ce   :  { %2047 = vmatprep.subr.mxu0 %v2644_v46 }
 0x3cf   :  { %2048 = vmatpush3.msra.mxu0 %v2644_v46 }
 0x3d0   :  { %2049 = vmatprep.subr.mxu0 %v2640_v41 }
 0x3d1   :  { %2050 = vmatpush3.msra.mxu0 %v2640_v41 }
 0x3ef   :  { %v815_v23 = vpop.permute.xlu1 %814 }
 0x3f0   :  { %v819_v37 = vadd.f32 %v815_v23, %v2706_v4 }
 0x3f1   :  { %v813_v24 = vpop.permute.xlu0 %812 }
 0x3f2   :  { %v818_v60 = vadd.f32 %v813_v24, %v2709_v5  ;;  %v1057_v5 = vld [vmem:[%s2961_s0 + $0x8] sm:$0xff]  ;;  %v2125_v24 = vld [vmem:[%s2958_s20] sm:$0xff] }
 0x3f3   :  { %v833_v25 = vpop.permute.xlu1 %832 }
 0x3f4   :  { %v837_v9 = vadd.f32 %v833_v25, %v819_v37 }
 0x3f5   :  { %v831_v26 = vpop.permute.xlu0 %830 }
 0x3f6   :  { %v836_v31 = vadd.f32 %v831_v26, %v818_v60  ;;  %v2126_v26 = vld [vmem:[%s2958_s20 + $0x8] sm:$0xff] }
 0x3f7   :  { %v851_v27 = vpop.permute.xlu1 %850 }
 0x3f8   :  { %v855_v43 = vadd.f32 %v851_v27, %v837_v9 }
 0x3f9   :  { %v849_v28 = vpop.permute.xlu0 %848 }
 0x3fa   :  { %v854_v41 = vadd.f32 %v849_v28, %v836_v31 }
 0x3fb   :  { %v869_v32 = vpop.permute.xlu1 %868 }
 0x3fc   :  { %v873_v47 = vadd.f32 %v869_v32, %v855_v43 }
 0x3fd   :  { %v867_v50 = vpop.permute.xlu0 %866 }
 0x3fe   :  { %v872_v48 = vadd.f32 %v867_v50, %v854_v41  ;;  %v1373_v41 = vld [vmem:[%s2945_s15 + $0x18] sm:$0xff] }
 0x3ff   :  { %v887_v8 = vpop.permute.xlu1 %886  ;;  %2065 = vmatprep.subr.mxu0 %v1373_v41 }
 0x400   :  { %v891_v51 = vadd.f32 %v887_v8, %v873_v47  ;;  %v1372_v47 = vld [vmem:[%s2945_s15 + $0x10] sm:$0xff] }
 0x401   :  { %v885_v14 = vpop.permute.xlu0 %884 }
 0x402   :  { %v890_v61 = vadd.f32 %v885_v14, %v872_v48  ;;  %v1371_v48 = vld [vmem:[%s2945_s15 + $0x8] sm:$0xff] }
 0x403   :  { %v905_v46 = vpop.permute.xlu1 %904 }
 0x404   :  { %v909_v56 = vadd.f32 %v905_v46, %v891_v51  ;;  %v1370_v51 = vld [vmem:[%s2945_s15] sm:$0xff] }
 0x405   :  { %v903_v45 = vpop.permute.xlu0 %902 }
 0x406   :  { %v908_v62 = vadd.f32 %v903_v45, %v890_v61  ;;  %v1470_v61 = vld [vmem:[%s2947_s17 + $0x30] sm:$0xff] }
 0x407   :  { %v923_v52 = vpop.permute.xlu1 %922 }
 0x408   :  { %v927_v0 = vadd.f32 %v923_v52, %v909_v56  ;;  %v1471_v52 = vld [vmem:[%s2947_s17 + $0x38] sm:$0xff]  ;;  %v1469_v56 = vld [vmem:[%s2947_s17 + $0x28] sm:$0xff] }
 0x409   :  { %v921_v58 = vpop.permute.xlu0 %920 }
 0x40a   :  { %v926_v3 = vadd.f32 %v921_v58, %v908_v62  ;;  %v1468_v58 = vld [vmem:[%s2947_s17 + $0x20] sm:$0xff] }
 0x474   :  { %v1987_v1 = vpop.f32.mrf.mxu0 }
 0x475   :  { %v1051_v4 = vadd.f32 %v1987_v1, %v927_v0 }
 0x476   :  { %v1045_v59 = vpop.f32.mrf.mxu0 }
 0x477   :  { %v1055_v6 = vmul.f32 0.35355338, %v1051_v4  ;;  %v1046_v7 = vadd.f32 %v1045_v59, %v926_v3 }
 0x479   :  { %v1054_v10 = vmul.f32 0.35355338, %v1046_v7  ;;  %v1059_v12 = vadd.f32 %v1057_v5, %v1055_v6  ;;  %v1675_v6 = vld [vmem:[%s2943_s13] ss:$0 sm:$0xff] }
 0x47b   :  { %v1063_v15 = vsel %vm762_vm4, %v1059_v12, -inf  ;;  %v1058_v13 = vadd.f32 %v1056_v11, %v1054_v10  ;;  %v1676_v11 = vld [vmem:[%s2944_s14] ss:$0 sm:$0xff] }
 0x47c   :  { %1064 = vmax.xlane.f32.xlu1 %v1063_v15 }
 0x47d   :  { %v1060_v57 = vsel %vm762_vm4, %v1058_v13, -inf }
 0x47e   :  { %1061 = vmax.xlane.f32.xlu0 %v1060_v57 }
 0x505   :  { %v1065_v2 = vpop.xlane.xlu1 %1064 }
 0x506   :  { %v1067_v29 = vsub.f32 %v1059_v12, %v1065_v2 }
 0x507   :  { %v1062_v30 = vpop.xlane.xlu0 %1061 }
 0x508   :  { %v1066_v34 = vsub.f32 %v1058_v13, %v1062_v30  ;;  %v1070_v33 = vmul.f32 1.442695, %v1067_v29  ;;  %v1467_v29 = vld [vmem:[%s2947_s17 + $0x18] sm:$0xff]  ;;  %v1466_v30 = vld [vmem:[%s2947_s17 + $0x10] sm:$0xff] }
 0x50a   :  { %v1068_v55 = vmul.f32 1.442695, %v1066_v34  ;;  %v1465_v34 = vld [vmem:[%s2947_s17 + $0x8] sm:$0xff] }
 0x50c   :  { %2113 = vpow2.f32 %v1068_v55  ;;  %v1677_v55 = vld [vmem:[%s2946_s16] ss:$0 sm:$0xff] }
 0x50d   :  { %2115 = vpow2.f32 %v1070_v33  ;;  %v1464_v33 = vld [vmem:[%s2947_s17] sm:$0xff]  ;;  %s2160_s17 = smov [#allocation2]  }
 0x50e   :  { %s1570_s28 = sshll.u32 %s2160_s17, 4  ;;  %s1571_s28 = int_to_ptr.vmem [resolvable:$true] %s1570_s28 }
 0x50f   :  { %s2127_s16 = scalar_lea.vmem %s1571_s28, 256  ;;  %p2132_p1 = scmp.lt.s32.totalorder %s1571_s28, %s1571_s28 }
 0x510   :  { %p2128_p0 = scmp.ne.s32.totalorder %s1571_s28, %s2127_s16  ;;  %p2133_p2 = scmp.lt.s32.totalorder %s2127_s16, %s2127_s16 }
 0x512   :  { %p2134_p3 = por %p2133_p2, %p2132_p1 }
 0x514   :  { %p2135_p4 = pnand %p2134_p3, %p2128_p0 }
 0x519   :  { %v2114_v42 = vpop.eup %2113 }
 0x51a   :  { %v2116_v35 = vpop.eup %2115  ;;  %2018 = vmatprep.mubr.msk.f32.mxu1 %vm762_vm4, %v2114_v42  ;;  %2051 = vmatprep.mubr.msk.f32.mxu0 %vm762_vm4, %v2114_v42 }
 0x51b   :  { %2019 = vmatmul.mubr.msk.f32.vlgmr.msra.gmra.mxu1 %vm762_vm4, %v2116_v35  ;;  %2052 = vmatmul.mubr.msk.f32.vlgmr.msra.gmra.mxu0 %vm762_vm4, %v2116_v35  ;;  %vm1479_vm4 = vcmask 523264  }
 0x51c   :  { %2055 = vmatpush3.msra.mxu1 %v1235_v54  ;;  %2066 = vmatpush3.msra.mxu0 %v1373_v41 }
 0x51d   :  { %2056 = vmatprep.subr.mxu1 %v1234_v39  ;;  %2067 = vmatprep.subr.mxu0 %v1372_v47 }
 0x51e   :  { %2057 = vmatpush3.msra.mxu1 %v1234_v39  ;;  %2068 = vmatpush3.msra.mxu0 %v1372_v47 }
 0x51f   :  { %2058 = vmatprep.subr.mxu1 %v1233_v53  ;;  %2069 = vmatprep.subr.mxu0 %v1371_v48 }
 0x520   :  { %2059 = vmatpush3.msra.mxu1 %v1233_v53  ;;  %2070 = vmatpush3.msra.mxu0 %v1371_v48 }
 0x521   :  { %2060 = vmatprep.subr.mxu1 %v1232_v44  ;;  %2071 = vmatprep.subr.mxu0 %v1370_v51 }
 0x522   :  { %2061 = vmatpush3.msra.mxu1 %v1232_v44  ;;  %2072 = vmatpush3.msra.mxu0 %v1370_v51 }
 0x523   :  { %2076 = vmatprep.subr.mxu1 %v1471_v52 }
 0x5db   :  { %v2020_v38 = vpop.f32.mrf.mxu1  ;;  %v2053_v63 = vpop.f32.mrf.mxu0 }
 0x5dc   :  { %2117 = vrcp.f32 %v2020_v38  ;;  %v1680_v38 = vld [vmem:[%s2948_s18] ss:$0 sm:$0xff] }
 0x5dd   :  { %v1144_v49 = vpop.f32.mrf.mxu1  ;;  %v1219_v40 = vpop.f32.mrf.mxu0 }
 0x5de   :  { %2119 = vrcp.f32 %v1144_v49 }
 0x5e9   :  { %v2118_v36 = vpop.eup %2117 }
 0x5ea   :  { %v1231_v18 = vmul.f32 %v2118_v36, %v2053_v63 }
 0x5eb   :  { %v2120_v16 = vpop.eup %2119 }
 0x5ec   :  { %v1229_v17 = vmul.f32 %v2120_v16, %v1219_v40 }
 0x5ee   :  { %2062 = vmatprep.mubr.msk.f32.mxu1 %vm67_vm0, %v1229_v17 }
 0x5ef   :  { %2063 = vmatmul.mubr.msk.f32.vlgmr.msra.gmra.mxu1 %vm67_vm0, %v1231_v18 }
 0x5f0   :  { %2077 = vmatpush3.msra.mxu1 %v1471_v52 }
 0x5f1   :  { %2078 = vmatprep.subr.mxu1 %v1470_v61 }
 0x5f2   :  { %2079 = vmatpush3.msra.mxu1 %v1470_v61 }
 0x5f3   :  { %2080 = vmatprep.subr.mxu1 %v1469_v56 }
 0x5f4   :  { %2081 = vmatpush3.msra.mxu1 %v1469_v56 }
 0x5f5   :  { %2082 = vmatprep.subr.mxu1 %v1468_v58 }
 0x5f6   :  { %2083 = vmatpush3.msra.mxu1 %v1468_v58 }
 0x5f7   :  { %2084 = vmatprep.subr.mxu1 %v1467_v29 }
 0x5f8   :  { %2085 = vmatpush3.msra.mxu1 %v1467_v29 }
 0x5f9   :  { %2086 = vmatprep.subr.mxu1 %v1466_v30 }
 0x5fa   :  { %2087 = vmatpush3.msra.mxu1 %v1466_v30 }
 0x5fb   :  { %2088 = vmatprep.subr.mxu1 %v1465_v34 }
 0x5fc   :  { %2089 = vmatpush3.msra.mxu1 %v1465_v34 }
 0x5fd   :  { %2090 = vmatprep.subr.mxu1 %v1464_v33 }
 0x5fe   :  { %2091 = vmatpush3.msra.mxu1 %v1464_v33 }
 0x6af   :  { %v2064_v19 = vpop.f32.mrf.mxu1 }
 0x6b0   :  { %v1321_v22 = vadd.f32 %v2064_v19, %v1672_v20 }
 0x6b1   :  { %v1315_v21 = vpop.f32.mrf.mxu1 }
 0x6b2   :  { %v1316_v23 = vadd.f32 %v1672_v20, %v1315_v21  ;;  %v2863_v27 = vadd.f32 %v2126_v26, %v1321_v22 }
 0x6b4   :  { %v2858_v25 = vadd.f32 %v2125_v24, %v1316_v23  ;;  %v1331_v32 = vsel %vm67_vm0, %v2863_v27, 0.0 }
 0x6b6   :  { %v1328_v28 = vsel %vm67_vm0, %v2858_v25, 0.0 }
 0x6b7   :  { %1329 = vadd.xlane.f32.xlu0 %v1328_v28 }
 0x6bb   :  { %1332 = vadd.xlane.f32.xlu0 %v1331_v32 }
 0x740   :  { %v1330_v50 = vpop.xlane.xlu0 %1329 }
 0x741   :  { %v1334_v8 = vmul.f32 0.03125, %v1330_v50 }
 0x743   :  { %v1336_v14 = vsub.f32 %v2858_v25, %v1334_v8 }
 0x744   :  { %v1333_v37 = vpop.xlane.xlu0 %1332 }
 0x745   :  { %v1335_v60 = vmul.f32 0.03125, %v1333_v37  ;;  %v1338_v9 = vmul.f32 %v1336_v14, %v1336_v14 }
 0x747   :  { %v1337_v46 = vsub.f32 %v2863_v27, %v1335_v60  ;;  %v1340_v31 = vsel %vm67_vm0, %v1338_v9, 0.0 }
 0x748   :  { %1341 = vadd.xlane.f32.xlu0 %v1340_v31 }
 0x749   :  { %v1339_v43 = vmul.f32 %v1337_v46, %v1337_v46 }
 0x74b   :  { %v1343_v45 = vsel %vm67_vm0, %v1339_v43, 0.0 }
 0x74c   :  { %1344 = vadd.xlane.f32.xlu1 %v1343_v45 }
 0x7d1   :  { %v1342_v62 = vpop.xlane.xlu0 %1341 }
 0x7d2   :  { %v1346_v0 = vmul.f32 0.03125, %v1342_v62 }
 0x7d4   :  { %v1348_v1 = vadd.f32 1e-05, %v1346_v0 }
 0x7d5   :  { %v1345_v3 = vpop.xlane.xlu1 %1344 }
 0x7d6   :  { %2121 = vrsqrt.f32 %v1348_v1  ;;  %v1347_v4 = vmul.f32 0.03125, %v1345_v3 }
 0x7d8   :  { %v1349_v59 = vadd.f32 1e-05, %v1347_v4 }
 0x7da   :  { %2123 = vrsqrt.f32 %v1349_v59 }
 0x7e3   :  { %v2122_v5 = vpop.eup %2121 }
 0x7e4   :  { %v1352_v7 = vmul.f32 %v2122_v5, %v1336_v14 }
 0x7e6   :  { %v1360_v10 = vmul.f32 %v1675_v6, %v1352_v7 }
 0x7e7   :  { %v2124_v12 = vpop.eup %2123 }
 0x7e8   :  { %v1353_v15 = vmul.f32 %v2124_v12, %v1337_v46  ;;  %v1368_v13 = vadd.f32 %v1676_v11, %v1360_v10 }
 0x7ea   :  { %v1361_v57 = vmul.f32 %v1675_v6, %v1353_v15  ;;  %2073 = vmatprep.mubr.msk.f32.mxu0 %vm67_vm0, %v1368_v13 }
 0x7ec   :  { %v1369_v2 = vadd.f32 %v1676_v11, %v1361_v57 }
 0x7ee   :  { %2074 = vmatmul.mubr.msk.f32.vlgmr.msra.gmra.mxu0 %vm67_vm0, %v1369_v2 }
 0x8ae   :  { %v2075_v42 = vpop.f32.mrf.mxu0 }
 0x8af   :  { %v1459_v35 = vadd.f32 %v2075_v42, %v1677_v55 }
 0x8b0   :  { %v1453_v54 = vpop.f32.mrf.mxu0 }
 0x8b1   :  { %v1454_v39 = vadd.f32 %v1677_v55, %v1453_v54  ;;  %v1463_v44 = vmax.f32 %v1459_v35, 0.0 }
 0x8b3   :  { %v1462_v53 = vmax.f32 %v1454_v39, 0.0 }
 0x8b5   :  { %2092 = vmatprep.mubr.msk.f32.mxu1 %vm1479_vm4, %v1462_v53 }
 0x8b6   :  { %2093 = vmatmul.mubr.msk.f32.vlgmr.msra.gmra.mxu1 %vm1479_vm4, %v1463_v44 }
 0x976   :  { %v2094_v49 = vpop.f32.mrf.mxu1 }
 0x977   :  { %v1558_v63 = vadd.f32 %v2094_v49, %v1680_v38 }
 0x978   :  { %v1552_v36 = vpop.f32.mrf.mxu1 }
 0x979   :  { %v1562_v16 = vadd.f32 %v1558_v63, %v2863_v27  ;;  %v1553_v40 = vadd.f32 %v1680_v38, %v1552_v36 }
 0x97b   :  { %1564 = vst.msk [vmem:[#allocation2 + $0x8] sm:$0xff] %vm67_vm0, %v1562_v16  ;;  %v1561_v17 = vadd.f32 %v1553_v40, %v2858_v25 }
 0x97d   :  { %1563 = vst.msk [vmem:[#allocation2] sm:$0xff] %vm67_vm0, %v1561_v17 }
 0x97e   :  { %2138 = shalt.err (!%p2135_p4)
}
 0x97f   :  { %s2161_s18 = smov 128   ;;  %s2162_s29 = smov 8  }
 0x980   :  { %1576 = dma.vmem_to_hbm [thread:$0]  %s1571_s28, 256, %s2949_s19, [#allocation3], %s2161_s18, %s2161_s18, %s2162_s29  }
 0x981   :  { %2147 = dma.done.wait [#allocation3], 256  }
 0x982   :  { %2148 = vsyncadd [#allocation3], 4294967040 }
 0x983   :  { %1580 = vsyncpa [#allocation3], 1 }

</bundles_post_ra>
